<compile_context>
chip_gen: v7x
topology: tpu7x:2x2x1
jax: 0.10.0
libtpu: 0.0.40
codegen_flags: <defaults>
</compile_context>

<pallas_src>
import functools
import math
from typing import NamedTuple

import jax
import jax.numpy as jnp
from jax.experimental import pallas as pl
from jax.experimental.pallas import tpu as pltpu

LANE = 128
_LOG_2PI = math.log(2.0 * math.pi)


class Dims(NamedTuple):
    obs_dim: int
    action_dim: int
    latent_dim: int
    ctx_dim: int


def _round_up(x, m):
    return (x + m - 1) // m * m


def _pad_last(x, width):
    pad = width - x.shape[-1]
    if pad <= 0:
        return x
    return jnp.pad(x, [(0, 0)] * (x.ndim - 1) + [(0, pad)])


def _softplus(x):
    # max(x, 0) + log(1 + exp(-|x|)); stable, only exp/log (EUP ops).
    return jnp.maximum(x, 0.0) + jnp.log(1.0 + jnp.exp(-jnp.abs(x)))


# ----------------------------------------------------------------------------
# Fused kernel: encoder MLP -> posterior -> z sample -> policy MLP -> TanhNormal
# ----------------------------------------------------------------------------
def _make_fused_kernel(*, act_dim, use_ib):
    def kernel(ctx_ref, obs_ref, epsz_ref, epsa_ref,
               w1e_ref, b1e_ref, w2e_ref, b2e_ref, woe_ref, boe_ref,
               w1o_ref, w1z_ref, b1p_ref, w2p_ref, b2p_ref, wop_ref, bop_ref,
               act_ref, mean_ref, lstd_ref, lpi_ref, pret_ref, tz_ref):
        f32, bf16 = jnp.float32, jnp.bfloat16
        n = obs_ref.shape[0]

        # ---- context encoder MLP (bf16 MXU operands, f32 accumulation) -----
        h = jnp.dot(ctx_ref[...].astype(bf16), w1e_ref[...],
                    preferred_element_type=f32)
        h = jnp.maximum(h + b1e_ref[...], 0.0)
        h = jnp.dot(h.astype(bf16), w2e_ref[...], preferred_element_type=f32)
        h = jnp.maximum(h + b2e_ref[...], 0.0)
        enc = jnp.dot(h.astype(bf16), woe_ref[...], preferred_element_type=f32)
        enc = enc + boe_ref[...]                     # (Nc, 2*LANE): mu | sigma

        mu = enc[:, :LANE]                           # lane-aligned split
        if use_ib:
            # softplus + product of gaussians over the context batch.
            sig2 = jnp.maximum(_softplus(enc[:, LANE:]), 1e-7)
            inv = 1.0 / sig2
            z_var = 1.0 / jnp.sum(inv, axis=0, keepdims=True)        # (1, LANE)
            z_mean = z_var * jnp.sum(mu * inv, axis=0, keepdims=True)
            z = z_mean + jnp.sqrt(z_var) * epsz_ref[...]             # rsample
        else:
            z = jnp.mean(mu, axis=0, keepdims=True)

        # ---- policy MLP on (obs, z); split layer 1 replaces concat/repeat --
        h = (jnp.dot(obs_ref[...].astype(bf16), w1o_ref[...],
                     preferred_element_type=f32)
             + jnp.dot(z.astype(bf16), w1z_ref[...],
                       preferred_element_type=f32)
             + b1p_ref[...])
        h = jnp.maximum(h, 0.0)
        h = jnp.dot(h.astype(bf16), w2p_ref[...], preferred_element_type=f32)
        h = jnp.maximum(h + b2p_ref[...], 0.0)
        head = jnp.dot(h.astype(bf16), wop_ref[...], preferred_element_type=f32)
        head = head + bop_ref[...]                   # (N, 2*LANE): mean|log_std

        loc = head[:, :LANE]
        log_std = jnp.clip(head[:, LANE:], -20.0, 2.0)
        std = jnp.exp(log_std)
        pre_tanh = loc + std * epsa_ref[...]         # rsample (noise zero-padded)
        actions = jnp.tanh(pre_tanh)

        # TanhNormal log-prob over the real action lanes only (garage formula:
        # Normal log-prob minus sum log(clip(1 - a^2, 0, 1) + 1e-6)).
        lane = jax.lax.broadcasted_iota(jnp.int32, (n, LANE), 1)
        amask = (lane < act_dim).astype(f32)
        lp_norm = jnp.sum(
            amask * (-0.5 * ((pre_tanh - loc) / std) ** 2
                     - log_std - 0.5 * _LOG_2PI),
            axis=-1, keepdims=True)
        ldj = jnp.sum(
            amask * jnp.log(jnp.clip(1.0 - actions * actions, 0.0, 1.0) + 1e-6),
            axis=-1, keepdims=True)

        act_ref[...] = actions
        mean_ref[...] = jnp.tanh(loc)                # garage TanhNormal.mean
        lstd_ref[...] = log_std
        lpi_ref[...] = lp_norm - ldj
        pret_ref[...] = pre_tanh
        tz_ref[...] = jnp.broadcast_to(z, (n, LANE))

    return kernel


# ----------------------------------------------------------------------------
# Parameter init (padded layout; padded rows/cols are zero, hence inert)
# ----------------------------------------------------------------------------
def _xavier_normal(key, fan_in, fan_out):
    std = (2.0 / (fan_in + fan_out)) ** 0.5
    return std * jax.random.normal(key, (fan_in, fan_out), dtype=jnp.float32)


def init_params(key, *, obs_dim, action_dim, latent_dim, ctx_dim,
                hidden=(32, 32)):
    """Encoder head packs mu into lanes [0,L) and pre-softplus sigma^2 into
    [LANE, LANE+L); policy head packs mean into [0,A) and log_std into
    [LANE, LANE+A).  Input feature dims pad to 16, hidden dims to 128."""
    assert latent_dim <= LANE and action_dim <= LANE
    h1, h2 = hidden
    H1, H2 = _round_up(h1, LANE), _round_up(h2, LANE)
    Cp, Op = _round_up(ctx_dim, 16), _round_up(obs_dim, 16)
    ks = jax.random.split(key, 10)

    def lin(k, fi, fo, shape):
        w = jnp.zeros(shape, jnp.float32)
        w = w.at[:fi, :fo].set(_xavier_normal(k, fi, fo))
        return w.astype(jnp.bfloat16)

    def head(k1, k2, fi, fo, hdim):
        w = jnp.zeros((hdim, 2 * LANE), jnp.float32)
        w = w.at[:fi, :fo].set(_xavier_normal(k1, fi, fo))
        w = w.at[:fi, LANE:LANE + fo].set(_xavier_normal(k2, fi, fo))
        return w.astype(jnp.bfloat16)

    return {
        # context encoder: ctx -> h1 -> h2 -> (mu | sigma)
        "w1e": lin(ks[0], ctx_dim, h1, (Cp, H1)),
        "b1e": jnp.zeros((1, H1), jnp.float32),
        "w2e": lin(ks[1], h1, h2, (H1, H2)),
        "b2e": jnp.zeros((1, H2), jnp.float32),
        "woe": head(ks[2], ks[3], h2, latent_dim, H2),
        "boe": jnp.zeros((1, 2 * LANE), jnp.float32),
        # policy: (obs, z) -> h1 -> h2 -> (mean | log_std); layer-1 split
        "w1p_obs": lin(ks[4], obs_dim, h1, (Op, H1)),
        "w1p_z": lin(ks[5], latent_dim, h1, (LANE, H1)),
        "b1p": jnp.zeros((1, H1), jnp.float32),
        "w2p": lin(ks[6], h1, h2, (H1, H2)),
        "b2p": jnp.zeros((1, H2), jnp.float32),
        "wop": head(ks[7], ks[8], h2, action_dim, H2),
        "bop": jnp.zeros((1, 2 * LANE), jnp.float32),
    }


# ----------------------------------------------------------------------------
# ContextConditionedPolicy forward (single fused pallas_call)
# ----------------------------------------------------------------------------
def context_conditioned_policy_forward(obs, context, params, key, *, dims,
                                        use_information_bottleneck=True):
    """obs: (X, N, O), context: (X, Nc, C).  Returns
    ((actions, mean, log_std, log_pi, pre_tanh), task_z) like the torch module."""
    X, N, _ = obs.shape
    Nc = context.shape[1]
    A, L = dims.action_dim, dims.latent_dim
    p = params

    # Reparameterization noise (jax.random; see TODO on torch RNG).
    k_z, k_a = jax.random.split(key)
    eps_z = jax.random.normal(k_z, (X, L), jnp.float32)
    eps_a = jax.random.normal(k_a, (X, N, A), jnp.float32)

    # f32 inputs; bf16 casts happen inside the kernel.  Zero-pad feature lanes.
    ctx_p = _pad_last(context.astype(jnp.float32), p["w1e"].shape[0])
    obs_p = _pad_last(obs.astype(jnp.float32), p["w1p_obs"].shape[0])
    epsz_p = _pad_last(eps_z[:, None, :], LANE)          # (X, 1, LANE)
    epsa_p = _pad_last(eps_a, LANE)                      # (X, N, LANE)

    Cp, H1 = p["w1e"].shape
    H2 = p["w2e"].shape[1]
    Op = p["w1p_obs"].shape[0]

    def task_spec(rows, cols):
        return pl.BlockSpec((None, rows, cols), lambda x: (x, 0, 0))

    def const_spec(arr):
        return pl.BlockSpec(arr.shape, lambda x: (0, 0))

    weight_names = ("w1e", "b1e", "w2e", "b2e", "woe", "boe",
                    "w1p_obs", "w1p_z", "b1p", "w2p", "b2p", "wop", "bop")
    in_specs = ([task_spec(Nc, Cp), task_spec(N, Op),
                 task_spec(1, LANE), task_spec(N, LANE)]
                + [const_spec(p[n]) for n in weight_names])

    out_shape = (
        jax.ShapeDtypeStruct((X, N, LANE), jnp.float32),   # actions
        jax.ShapeDtypeStruct((X, N, LANE), jnp.float32),   # mean (tanh of loc)
        jax.ShapeDtypeStruct((X, N, LANE), jnp.float32),   # log_std
        jax.ShapeDtypeStruct((X, N, 1), jnp.float32),      # log_pi
        jax.ShapeDtypeStruct((X, N, LANE), jnp.float32),   # pre_tanh
        jax.ShapeDtypeStruct((X, N, LANE), jnp.float32),   # task_z
    )
    out_specs = (task_spec(N, LANE), task_spec(N, LANE), task_spec(N, LANE),
                 task_spec(N, 1), task_spec(N, LANE), task_spec(N, LANE))

    # Advisory cost estimate (counts padded lanes; scheduling hint only).
    flops = 2 * X * (Nc * (Cp * H1 + H1 * H2 + H2 * 2 * LANE)
                     + N * (Op * H1 + H1 * H2 + H2 * 2 * LANE) + LANE * H1)

    def _nbytes(a):
        return math.prod(a.shape) * a.dtype.itemsize

    bytes_accessed = (sum(_nbytes(a) for a in (ctx_p, obs_p, epsz_p, epsa_p))
                      + sum(_nbytes(p[n]) for n in weight_names)
                      + sum(math.prod(s.shape) * 4 for s in out_shape))

    kernel = _make_fused_kernel(act_dim=A, use_ib=use_information_bottleneck)
    outs = pl.pallas_call(
        kernel,
        out_shape=out_shape,
        grid=(X,),
        in_specs=in_specs,
        out_specs=out_specs,
        compiler_params=pltpu.CompilerParams(
            dimension_semantics=("parallel",)),
        cost_estimate=pl.CostEstimate(
            flops=int(flops),
            transcendentals=int(X * LANE * (2 * Nc + 4 * N)),
            bytes_accessed=int(bytes_accessed)),
    )(ctx_p, obs_p, epsz_p, epsa_p, *(p[n] for n in weight_names))

    actions_p, mean_p, lstd_p, lpi_p, pret_p, tz_p = outs
    actions = actions_p[..., :A].reshape(X * N, A)
    mean = mean_p[..., :A].reshape(X * N, A)
    log_std = lstd_p[..., :A].reshape(X * N, A)
    log_pi = lpi_p.reshape(X * N, 1)
    pre_tanh = pret_p[..., :A].reshape(X * N, A)
    task_z = tz_p[..., :L].reshape(X * N, L)
    return (actions, mean, log_std, log_pi, pre_tanh), task_z


# ----------------------------------------------------------------------------
# Pure-JAX reference (same bf16-operand / f32-accumulation math)
# ----------------------------------------------------------------------------
def forward_reference(obs, context, params, key, *, dims,
                      use_information_bottleneck=True):
    X, N, _ = obs.shape
    A, L = dims.action_dim, dims.latent_dim
    p = params
    f32, bf16 = jnp.float32, jnp.bfloat16

    k_z, k_a = jax.random.split(key)
    eps_z = jax.random.normal(k_z, (X, L), f32)
    eps_a = jax.random.normal(k_a, (X, N, A), f32)

    ctx = _pad_last(context.astype(f32), p["w1e"].shape[0]).astype(bf16)
    h = jnp.maximum(jnp.dot(ctx, p["w1e"], preferred_element_type=f32)
                    + p["b1e"], 0.0)
    h = jnp.maximum(jnp.dot(h.astype(bf16), p["w2e"],
                            preferred_element_type=f32) + p["b2e"], 0.0)
    enc = jnp.dot(h.astype(bf16), p["woe"], preferred_element_type=f32) + p["boe"]
    mu = enc[..., :L]
    if use_information_bottleneck:
        sig2 = jnp.maximum(_softplus(enc[..., LANE:LANE + L]), 1e-7)
        inv = 1.0 / sig2
        z_var = 1.0 / jnp.sum(inv, axis=1)
        z_mean = z_var * jnp.sum(mu * inv, axis=1)
        z = z_mean + jnp.sqrt(z_var) * eps_z
    else:
        z = jnp.mean(mu, axis=1)

    task_z = jnp.repeat(z, N, axis=0)                    # (X*N, L)
    obs2 = _pad_last(obs.astype(f32), p["w1p_obs"].shape[0]).reshape(X * N, -1)
    h = (jnp.dot(obs2.astype(bf16), p["w1p_obs"], preferred_element_type=f32)
         + jnp.dot(task_z.astype(bf16), p["w1p_z"][:L],
                   preferred_element_type=f32)
         + p["b1p"])
    h = jnp.maximum(h, 0.0)
    h = jnp.maximum(jnp.dot(h.astype(bf16), p["w2p"],
                            preferred_element_type=f32) + p["b2p"], 0.0)
    head = jnp.dot(h.astype(bf16), p["wop"], preferred_element_type=f32) + p["bop"]
    loc = head[:, :A]
    log_std = jnp.clip(head[:, LANE:LANE + A], -20.0, 2.0)
    std = jnp.exp(log_std)
    pre_tanh = loc + std * eps_a.reshape(X * N, A)
    actions = jnp.tanh(pre_tanh)
    lp_norm = jnp.sum(-0.5 * ((pre_tanh - loc) / std) ** 2 - log_std
                      - 0.5 * _LOG_2PI, axis=-1, keepdims=True)
    ldj = jnp.sum(jnp.log(jnp.clip(1.0 - actions * actions, 0.0, 1.0) + 1e-6),
                  axis=-1, keepdims=True)
    return (actions, jnp.tanh(loc), log_std, lp_norm - ldj, pre_tanh), task_z


# ----------------------------------------------------------------------------
if __name__ == "__main__":
    root = jax.random.PRNGKey(0)
    k_obs, k_ctx, k_par, k_fwd = jax.random.split(root, 4)

    num_tasks, batch, ctx_batch = 2, 5, 8
    obs_dim, action_dim, latent_dim = 17, 6, 5
    ctx_dim = obs_dim + action_dim + 1            # (o, a, r); use_next_obs=False
    dims = Dims(obs_dim=obs_dim, action_dim=action_dim,
                latent_dim=latent_dim, ctx_dim=ctx_dim)

    obs = jax.random.normal(k_obs, (num_tasks, batch, obs_dim), jnp.float32)
    context = jax.random.normal(k_ctx, (num_tasks, ctx_batch, ctx_dim),
                                jnp.float32)
    params = init_params(k_par, obs_dim=obs_dim, action_dim=action_dim,
                         latent_dim=latent_dim, ctx_dim=ctx_dim,
                         hidden=(32, 32))

    fwd = jax.jit(functools.partial(context_conditioned_policy_forward,
                                    dims=dims, use_information_bottleneck=True))
    (actions, mean, log_std, log_pi, pre_tanh), task_z = jax.block_until_ready(
        fwd(obs, context, params, k_fwd))

    # Pure-JAX reference check of the fused kernel.
    (a_r, m_r, s_r, lp_r, pt_r), tz_r = forward_reference(
        obs, context, params, k_fwd, dims=dims, use_information_bottleneck=True)

    assert actions.shape == (num_tasks * batch, action_dim)
    assert mean.shape == (num_tasks * batch, action_dim)
    assert log_std.shape == (num_tasks * batch, action_dim)
    assert log_pi.shape == (num_tasks * batch, 1)
    assert pre_tanh.shape == (num_tasks * batch, action_dim)
    assert task_z.shape == (num_tasks * batch, latent_dim)

    assert jnp.allclose(actions, a_r, atol=1e-2, rtol=1e-2)
    assert jnp.allclose(mean, m_r, atol=1e-2, rtol=1e-2)
    assert jnp.allclose(log_std, s_r, atol=1e-2, rtol=1e-2)
    assert jnp.allclose(pre_tanh, pt_r, atol=1e-2, rtol=1e-2)
    assert jnp.allclose(task_z, tz_r, atol=1e-2, rtol=1e-2)
    assert jnp.allclose(log_pi, lp_r, atol=3e-2, rtol=1e-2)
    assert bool(jnp.all(jnp.isfinite(actions)))
    assert bool(jnp.all(jnp.isfinite(log_pi)))

    print("KERNEL_OK")
</pallas_src>

<mosaic_0001>
module attributes {stable_mosaic.version = 11 : i64} {
  func.func @kernel(%arg0: i32, %arg1: memref<1x8x32xf32, #tpu.memory_space<vmem>>, %arg2: memref<1x5x32xf32, #tpu.memory_space<vmem>>, %arg3: memref<1x1x128xf32, #tpu.memory_space<vmem>>, %arg4: memref<1x5x128xf32, #tpu.memory_space<vmem>>, %arg5: memref<32x128xbf16, #tpu.memory_space<vmem>>, %arg6: memref<1x128xf32, #tpu.memory_space<vmem>>, %arg7: memref<128x128xbf16, #tpu.memory_space<vmem>>, %arg8: memref<1x128xf32, #tpu.memory_space<vmem>>, %arg9: memref<128x256xbf16, #tpu.memory_space<vmem>>, %arg10: memref<1x256xf32, #tpu.memory_space<vmem>>, %arg11: memref<32x128xbf16, #tpu.memory_space<vmem>>, %arg12: memref<128x128xbf16, #tpu.memory_space<vmem>>, %arg13: memref<1x128xf32, #tpu.memory_space<vmem>>, %arg14: memref<128x128xbf16, #tpu.memory_space<vmem>>, %arg15: memref<1x128xf32, #tpu.memory_space<vmem>>, %arg16: memref<128x256xbf16, #tpu.memory_space<vmem>>, %arg17: memref<1x256xf32, #tpu.memory_space<vmem>>, %arg18: memref<1x5x128xf32, #tpu.memory_space<vmem>>, %arg19: memref<1x5x128xf32, #tpu.memory_space<vmem>>, %arg20: memref<1x5x128xf32, #tpu.memory_space<vmem>>, %arg21: memref<1x5x1xf32, #tpu.memory_space<vmem>>, %arg22: memref<1x5x128xf32, #tpu.memory_space<vmem>>, %arg23: memref<1x5x128xf32, #tpu.memory_space<vmem>>) attributes {dimension_semantics = [#tpu.dimension_semantics<parallel>], iteration_bounds = array<i64: 2>, scalar_prefetch = 0 : i64, scratch_operands = 0 : i64, tpu.core_type = #tpu.core_type<tc>, window_params = [{transform_indices = @transform_0, window_bounds = array<i64: 1, 8, 32>}, {transform_indices = @transform_1, window_bounds = array<i64: 1, 5, 32>}, {transform_indices = @transform_2, window_bounds = array<i64: 1, 1, 128>}, {transform_indices = @transform_3, window_bounds = array<i64: 1, 5, 128>}, {pipeline_mode = #tpu.pipeline_mode<synchronous>, transform_indices = @transform_4, window_bounds = array<i64: 32, 128>}, {pipeline_mode = #tpu.pipeline_mode<synchronous>, transform_indices = @transform_5, window_bounds = array<i64: 1, 128>}, {pipeline_mode = #tpu.pipeline_mode<synchronous>, transform_indices = @transform_6, window_bounds = array<i64: 128, 128>}, {pipeline_mode = #tpu.pipeline_mode<synchronous>, transform_indices = @transform_7, window_bounds = array<i64: 1, 128>}, {pipeline_mode = #tpu.pipeline_mode<synchronous>, transform_indices = @transform_8, window_bounds = array<i64: 128, 256>}, {pipeline_mode = #tpu.pipeline_mode<synchronous>, transform_indices = @transform_9, window_bounds = array<i64: 1, 256>}, {pipeline_mode = #tpu.pipeline_mode<synchronous>, transform_indices = @transform_10, window_bounds = array<i64: 32, 128>}, {pipeline_mode = #tpu.pipeline_mode<synchronous>, transform_indices = @transform_11, window_bounds = array<i64: 128, 128>}, {pipeline_mode = #tpu.pipeline_mode<synchronous>, transform_indices = @transform_12, window_bounds = array<i64: 1, 128>}, {pipeline_mode = #tpu.pipeline_mode<synchronous>, transform_indices = @transform_13, window_bounds = array<i64: 128, 128>}, {pipeline_mode = #tpu.pipeline_mode<synchronous>, transform_indices = @transform_14, window_bounds = array<i64: 1, 128>}, {pipeline_mode = #tpu.pipeline_mode<synchronous>, transform_indices = @transform_15, window_bounds = array<i64: 128, 256>}, {pipeline_mode = #tpu.pipeline_mode<synchronous>, transform_indices = @transform_16, window_bounds = array<i64: 1, 256>}, {transform_indices = @transform_17, window_bounds = array<i64: 1, 5, 128>}, {transform_indices = @transform_18, window_bounds = array<i64: 1, 5, 128>}, {transform_indices = @transform_19, window_bounds = array<i64: 1, 5, 128>}, {transform_indices = @transform_20, window_bounds = array<i64: 1, 5, 1>}, {transform_indices = @transform_21, window_bounds = array<i64: 1, 5, 128>}, {transform_indices = @transform_22, window_bounds = array<i64: 1, 5, 128>}]} {
    %c0 = arith.constant 0 : index
    %c0_0 = arith.constant 0 : index
    %c0_1 = arith.constant 0 : index
    %0 = vector.load %arg1[%c0, %c0_0, %c0_1] : memref<1x8x32xf32, #tpu.memory_space<vmem>>, vector<1x8x32xf32>
    %1 = vector.shape_cast %0 : vector<1x8x32xf32> to vector<8x32xf32>
    %2 = arith.truncf %1 : vector<8x32xf32> to vector<8x32xbf16>
    %c0_2 = arith.constant 0 : index
    %c0_3 = arith.constant 0 : index
    %3 = vector.load %arg5[%c0_2, %c0_3] : memref<32x128xbf16, #tpu.memory_space<vmem>>, vector<32x128xbf16>
    %cst = arith.constant dense<0.000000e+00> : vector<8x128xf32>
    %4 = tpu.matmul %2, %3, %cst {dimension_numbers = #tpu.dot_dimension_numbers<[1], [0], [0], [1], [0, 0, 1, 1], [], []>} : vector<8x32xbf16>, vector<32x128xbf16>, vector<8x128xf32> -> vector<8x128xf32>
    %c0_4 = arith.constant 0 : index
    %c0_5 = arith.constant 0 : index
    %5 = vector.load %arg6[%c0_4, %c0_5] : memref<1x128xf32, #tpu.memory_space<vmem>>, vector<1x128xf32>
    %6 = vector.broadcast %5 : vector<1x128xf32> to vector<8x128xf32>
    %7 = arith.addf %4, %6 : vector<8x128xf32>
    %cst_6 = arith.constant 0.000000e+00 : f32
    %8 = vector.broadcast %cst_6 : f32 to vector<8x128xf32>
    %9 = arith.maximumf %7, %8 : vector<8x128xf32>
    %10 = arith.truncf %9 : vector<8x128xf32> to vector<8x128xbf16>
    %c0_7 = arith.constant 0 : index
    %c0_8 = arith.constant 0 : index
    %11 = vector.load %arg7[%c0_7, %c0_8] : memref<128x128xbf16, #tpu.memory_space<vmem>>, vector<128x128xbf16>
    %cst_9 = arith.constant dense<0.000000e+00> : vector<8x128xf32>
    %12 = tpu.matmul %10, %11, %cst_9 {dimension_numbers = #tpu.dot_dimension_numbers<[1], [0], [0], [1], [0, 0, 1, 1], [], []>} : vector<8x128xbf16>, vector<128x128xbf16>, vector<8x128xf32> -> vector<8x128xf32>
    %c0_10 = arith.constant 0 : index
    %c0_11 = arith.constant 0 : index
    %13 = vector.load %arg8[%c0_10, %c0_11] : memref<1x128xf32, #tpu.memory_space<vmem>>, vector<1x128xf32>
    %14 = vector.broadcast %13 : vector<1x128xf32> to vector<8x128xf32>
    %15 = arith.addf %12, %14 : vector<8x128xf32>
    %cst_12 = arith.constant 0.000000e+00 : f32
    %16 = vector.broadcast %cst_12 : f32 to vector<8x128xf32>
    %17 = arith.maximumf %15, %16 : vector<8x128xf32>
    %18 = arith.truncf %17 : vector<8x128xf32> to vector<8x128xbf16>
    %c0_13 = arith.constant 0 : index
    %c0_14 = arith.constant 0 : index
    %19 = vector.load %arg9[%c0_13, %c0_14] : memref<128x256xbf16, #tpu.memory_space<vmem>>, vector<128x256xbf16>
    %cst_15 = arith.constant dense<0.000000e+00> : vector<8x256xf32>
    %20 = tpu.matmul %18, %19, %cst_15 {dimension_numbers = #tpu.dot_dimension_numbers<[1], [0], [0], [1], [0, 0, 1, 1], [], []>} : vector<8x128xbf16>, vector<128x256xbf16>, vector<8x256xf32> -> vector<8x256xf32>
    %c0_16 = arith.constant 0 : index
    %c0_17 = arith.constant 0 : index
    %21 = vector.load %arg10[%c0_16, %c0_17] : memref<1x256xf32, #tpu.memory_space<vmem>>, vector<1x256xf32>
    %22 = vector.broadcast %21 : vector<1x256xf32> to vector<8x256xf32>
    %23 = arith.addf %20, %22 : vector<8x256xf32>
    %24 = vector.extract_strided_slice %23 {offsets = [0, 0], sizes = [8, 128], strides = [1, 1]} : vector<8x256xf32> to vector<8x128xf32>
    %25 = vector.extract_strided_slice %23 {offsets = [0, 128], sizes = [8, 128], strides = [1, 1]} : vector<8x256xf32> to vector<8x128xf32>
    %cst_18 = arith.constant 0.000000e+00 : f32
    %26 = vector.broadcast %cst_18 : f32 to vector<8x128xf32>
    %27 = arith.maximumf %25, %26 : vector<8x128xf32>
    %28 = math.absf %25 : vector<8x128xf32>
    %cst_19 = arith.constant 0.000000e+00 : f32
    %29 = vector.broadcast %cst_19 : f32 to vector<8x128xf32>
    %30 = arith.subf %29, %28 : vector<8x128xf32>
    %31 = math.exp %30 : vector<8x128xf32>
    %cst_20 = arith.constant 1.000000e+00 : f32
    %32 = vector.broadcast %cst_20 : f32 to vector<8x128xf32>
    %33 = arith.addf %32, %31 : vector<8x128xf32>
    %34 = math.log %33 : vector<8x128xf32>
    %35 = arith.addf %27, %34 : vector<8x128xf32>
    %cst_21 = arith.constant 1.000000e-07 : f32
    %36 = vector.broadcast %cst_21 : f32 to vector<8x128xf32>
    %37 = arith.maximumf %35, %36 : vector<8x128xf32>
    %cst_22 = arith.constant 1.000000e+00 : f32
    %38 = vector.broadcast %cst_22 : f32 to vector<8x128xf32>
    %39 = arith.divf %38, %37 : vector<8x128xf32>
    %cst_23 = arith.constant dense<0.000000e+00> : vector<128xf32>
    %40 = vector.multi_reduction <add>, %39, %cst_23 [0] : vector<8x128xf32> to vector<128xf32>
    %41 = vector.shape_cast %40 : vector<128xf32> to vector<1x128xf32>
    %cst_24 = arith.constant 1.000000e+00 : f32
    %42 = vector.broadcast %cst_24 : f32 to vector<1x128xf32>
    %43 = arith.divf %42, %41 : vector<1x128xf32>
    %44 = arith.mulf %24, %39 : vector<8x128xf32>
    %cst_25 = arith.constant dense<0.000000e+00> : vector<128xf32>
    %45 = vector.multi_reduction <add>, %44, %cst_25 [0] : vector<8x128xf32> to vector<128xf32>
    %46 = vector.shape_cast %45 : vector<128xf32> to vector<1x128xf32>
    %47 = arith.mulf %43, %46 : vector<1x128xf32>
    %48 = math.sqrt %43 : vector<1x128xf32>
    %c0_26 = arith.constant 0 : index
    %c0_27 = arith.constant 0 : index
    %c0_28 = arith.constant 0 : index
    %49 = vector.load %arg3[%c0_26, %c0_27, %c0_28] : memref<1x1x128xf32, #tpu.memory_space<vmem>>, vector<1x1x128xf32>
    %50 = vector.shape_cast %49 : vector<1x1x128xf32> to vector<1x128xf32>
    %51 = arith.mulf %48, %50 : vector<1x128xf32>
    %52 = arith.addf %47, %51 : vector<1x128xf32>
    %c0_29 = arith.constant 0 : index
    %c0_30 = arith.constant 0 : index
    %c0_31 = arith.constant 0 : index
    %53 = vector.load %arg2[%c0_29, %c0_30, %c0_31] : memref<1x5x32xf32, #tpu.memory_space<vmem>>, vector<1x5x32xf32>
    %54 = vector.shape_cast %53 : vector<1x5x32xf32> to vector<5x32xf32>
    %55 = arith.truncf %54 : vector<5x32xf32> to vector<5x32xbf16>
    %c0_32 = arith.constant 0 : index
    %c0_33 = arith.constant 0 : index
    %56 = vector.load %arg11[%c0_32, %c0_33] : memref<32x128xbf16, #tpu.memory_space<vmem>>, vector<32x128xbf16>
    %cst_34 = arith.constant dense<0.000000e+00> : vector<5x128xf32>
    %57 = tpu.matmul %55, %56, %cst_34 {dimension_numbers = #tpu.dot_dimension_numbers<[1], [0], [0], [1], [0, 0, 1, 1], [], []>} : vector<5x32xbf16>, vector<32x128xbf16>, vector<5x128xf32> -> vector<5x128xf32>
    %58 = arith.truncf %52 : vector<1x128xf32> to vector<1x128xbf16>
    %c0_35 = arith.constant 0 : index
    %c0_36 = arith.constant 0 : index
    %59 = vector.load %arg12[%c0_35, %c0_36] : memref<128x128xbf16, #tpu.memory_space<vmem>>, vector<128x128xbf16>
    %cst_37 = arith.constant dense<0.000000e+00> : vector<1x128xf32>
    %60 = tpu.matmul %58, %59, %cst_37 {dimension_numbers = #tpu.dot_dimension_numbers<[1], [0], [0], [1], [0, 0, 1, 1], [], []>} : vector<1x128xbf16>, vector<128x128xbf16>, vector<1x128xf32> -> vector<1x128xf32>
    %61 = vector.broadcast %60 : vector<1x128xf32> to vector<5x128xf32>
    %62 = arith.addf %57, %61 : vector<5x128xf32>
    %c0_38 = arith.constant 0 : index
    %c0_39 = arith.constant 0 : index
    %63 = vector.load %arg13[%c0_38, %c0_39] : memref<1x128xf32, #tpu.memory_space<vmem>>, vector<1x128xf32>
    %64 = vector.broadcast %63 : vector<1x128xf32> to vector<5x128xf32>
    %65 = arith.addf %62, %64 : vector<5x128xf32>
    %cst_40 = arith.constant 0.000000e+00 : f32
    %66 = vector.broadcast %cst_40 : f32 to vector<5x128xf32>
    %67 = arith.maximumf %65, %66 : vector<5x128xf32>
    %68 = arith.truncf %67 : vector<5x128xf32> to vector<5x128xbf16>
    %c0_41 = arith.constant 0 : index
    %c0_42 = arith.constant 0 : index
    %69 = vector.load %arg14[%c0_41, %c0_42] : memref<128x128xbf16, #tpu.memory_space<vmem>>, vector<128x128xbf16>
    %cst_43 = arith.constant dense<0.000000e+00> : vector<5x128xf32>
    %70 = tpu.matmul %68, %69, %cst_43 {dimension_numbers = #tpu.dot_dimension_numbers<[1], [0], [0], [1], [0, 0, 1, 1], [], []>} : vector<5x128xbf16>, vector<128x128xbf16>, vector<5x128xf32> -> vector<5x128xf32>
    %c0_44 = arith.constant 0 : index
    %c0_45 = arith.constant 0 : index
    %71 = vector.load %arg15[%c0_44, %c0_45] : memref<1x128xf32, #tpu.memory_space<vmem>>, vector<1x128xf32>
    %72 = vector.broadcast %71 : vector<1x128xf32> to vector<5x128xf32>
    %73 = arith.addf %70, %72 : vector<5x128xf32>
    %cst_46 = arith.constant 0.000000e+00 : f32
    %74 = vector.broadcast %cst_46 : f32 to vector<5x128xf32>
    %75 = arith.maximumf %73, %74 : vector<5x128xf32>
    %76 = arith.truncf %75 : vector<5x128xf32> to vector<5x128xbf16>
    %c0_47 = arith.constant 0 : index
    %c0_48 = arith.constant 0 : index
    %77 = vector.load %arg16[%c0_47, %c0_48] : memref<128x256xbf16, #tpu.memory_space<vmem>>, vector<128x256xbf16>
    %cst_49 = arith.constant dense<0.000000e+00> : vector<5x256xf32>
    %78 = tpu.matmul %76, %77, %cst_49 {dimension_numbers = #tpu.dot_dimension_numbers<[1], [0], [0], [1], [0, 0, 1, 1], [], []>} : vector<5x128xbf16>, vector<128x256xbf16>, vector<5x256xf32> -> vector<5x256xf32>
    %c0_50 = arith.constant 0 : index
    %c0_51 = arith.constant 0 : index
    %79 = vector.load %arg17[%c0_50, %c0_51] : memref<1x256xf32, #tpu.memory_space<vmem>>, vector<1x256xf32>
    %80 = vector.broadcast %79 : vector<1x256xf32> to vector<5x256xf32>
    %81 = arith.addf %78, %80 : vector<5x256xf32>
    %82 = vector.extract_strided_slice %81 {offsets = [0, 0], sizes = [5, 128], strides = [1, 1]} : vector<5x256xf32> to vector<5x128xf32>
    %83 = vector.extract_strided_slice %81 {offsets = [0, 128], sizes = [5, 128], strides = [1, 1]} : vector<5x256xf32> to vector<5x128xf32>
    %cst_52 = arith.constant -2.000000e+01 : f32
    %cst_53 = arith.constant 2.000000e+00 : f32
    %84 = vector.broadcast %cst_52 : f32 to vector<5x128xf32>
    %85 = arith.maximumf %84, %83 : vector<5x128xf32>
    %86 = vector.broadcast %cst_53 : f32 to vector<5x128xf32>
    %87 = arith.minimumf %86, %85 : vector<5x128xf32>
    %88 = math.exp %87 : vector<5x128xf32>
    %c0_54 = arith.constant 0 : index
    %c0_55 = arith.constant 0 : index
    %c0_56 = arith.constant 0 : index
    %89 = vector.load %arg4[%c0_54, %c0_55, %c0_56] : memref<1x5x128xf32, #tpu.memory_space<vmem>>, vector<1x5x128xf32>
    %90 = vector.shape_cast %89 : vector<1x5x128xf32> to vector<5x128xf32>
    %91 = arith.mulf %88, %90 : vector<5x128xf32>
    %92 = arith.addf %82, %91 : vector<5x128xf32>
    %93 = math.tanh %92 : vector<5x128xf32>
    %94 = tpu.iota {dimensions = array<i32: 1>} : vector<5x128xi32>
    %c6_i32 = arith.constant 6 : i32
    %95 = vector.broadcast %c6_i32 : i32 to vector<5x128xi32>
    %96 = arith.cmpi slt, %94, %95 : vector<5x128xi32>
    %97 = arith.extui %96 : vector<5x128xi1> to vector<5x128xi32>
    %98 = arith.sitofp %97 : vector<5x128xi32> to vector<5x128xf32>
    %99 = arith.subf %92, %82 : vector<5x128xf32>
    %100 = arith.divf %99, %88 : vector<5x128xf32>
    %101 = arith.mulf %100, %100 : vector<5x128xf32>
    %cst_57 = arith.constant -5.000000e-01 : f32
    %102 = vector.broadcast %cst_57 : f32 to vector<5x128xf32>
    %103 = arith.mulf %102, %101 : vector<5x128xf32>
    %104 = arith.subf %103, %87 : vector<5x128xf32>
    %cst_58 = arith.constant 0.918938517 : f32
    %105 = vector.broadcast %cst_58 : f32 to vector<5x128xf32>
    %106 = arith.subf %104, %105 : vector<5x128xf32>
    %107 = arith.mulf %98, %106 : vector<5x128xf32>
    %cst_59 = arith.constant dense<0.000000e+00> : vector<5xf32>
    %108 = vector.multi_reduction <add>, %107, %cst_59 [1] : vector<5x128xf32> to vector<5xf32>
    %109 = vector.shape_cast %108 : vector<5xf32> to vector<5x1xf32>
    %110 = arith.mulf %93, %93 : vector<5x128xf32>
    %cst_60 = arith.constant 1.000000e+00 : f32
    %111 = vector.broadcast %cst_60 : f32 to vector<5x128xf32>
    %112 = arith.subf %111, %110 : vector<5x128xf32>
    %cst_61 = arith.constant 0.000000e+00 : f32
    %cst_62 = arith.constant 1.000000e+00 : f32
    %113 = vector.broadcast %cst_61 : f32 to vector<5x128xf32>
    %114 = arith.maximumf %113, %112 : vector<5x128xf32>
    %115 = vector.broadcast %cst_62 : f32 to vector<5x128xf32>
    %116 = arith.minimumf %115, %114 : vector<5x128xf32>
    %cst_63 = arith.constant 9.99999997E-7 : f32
    %117 = vector.broadcast %cst_63 : f32 to vector<5x128xf32>
    %118 = arith.addf %116, %117 : vector<5x128xf32>
    %119 = math.log %118 : vector<5x128xf32>
    %120 = arith.mulf %98, %119 : vector<5x128xf32>
    %cst_64 = arith.constant dense<0.000000e+00> : vector<5xf32>
    %121 = vector.multi_reduction <add>, %120, %cst_64 [1] : vector<5x128xf32> to vector<5xf32>
    %122 = vector.shape_cast %121 : vector<5xf32> to vector<5x1xf32>
    %c0_65 = arith.constant 0 : index
    %c0_66 = arith.constant 0 : index
    %c0_67 = arith.constant 0 : index
    %123 = vector.load %arg18[%c0_65, %c0_66, %c0_67] : memref<1x5x128xf32, #tpu.memory_space<vmem>>, vector<1x5x128xf32>
    %124 = vector.shape_cast %123 : vector<1x5x128xf32> to vector<5x128xf32>
    %125 = vector.shape_cast %93 : vector<5x128xf32> to vector<1x5x128xf32>
    tpu.vector_store %arg18[%c0_65, %c0_66, %c0_67], %125 {strides = array<i32>} : memref<1x5x128xf32, #tpu.memory_space<vmem>>, vector<1x5x128xf32>,
    %126 = math.tanh %82 : vector<5x128xf32>
    %c0_68 = arith.constant 0 : index
    %c0_69 = arith.constant 0 : index
    %c0_70 = arith.constant 0 : index
    %127 = vector.load %arg19[%c0_68, %c0_69, %c0_70] : memref<1x5x128xf32, #tpu.memory_space<vmem>>, vector<1x5x128xf32>
    %128 = vector.shape_cast %127 : vector<1x5x128xf32> to vector<5x128xf32>
    %129 = vector.shape_cast %126 : vector<5x128xf32> to vector<1x5x128xf32>
    tpu.vector_store %arg19[%c0_68, %c0_69, %c0_70], %129 {strides = array<i32>} : memref<1x5x128xf32, #tpu.memory_space<vmem>>, vector<1x5x128xf32>,
    %c0_71 = arith.constant 0 : index
    %c0_72 = arith.constant 0 : index
    %c0_73 = arith.constant 0 : index
    %130 = vector.load %arg20[%c0_71, %c0_72, %c0_73] : memref<1x5x128xf32, #tpu.memory_space<vmem>>, vector<1x5x128xf32>
    %131 = vector.shape_cast %130 : vector<1x5x128xf32> to vector<5x128xf32>
    %132 = vector.shape_cast %87 : vector<5x128xf32> to vector<1x5x128xf32>
    tpu.vector_store %arg20[%c0_71, %c0_72, %c0_73], %132 {strides = array<i32>} : memref<1x5x128xf32, #tpu.memory_space<vmem>>, vector<1x5x128xf32>,
    %133 = arith.subf %109, %122 : vector<5x1xf32>
    %c0_74 = arith.constant 0 : index
    %c0_75 = arith.constant 0 : index
    %c0_76 = arith.constant 0 : index
    %134 = vector.load %arg21[%c0_74, %c0_75, %c0_76] : memref<1x5x1xf32, #tpu.memory_space<vmem>>, vector<1x5x1xf32>
    %135 = vector.shape_cast %134 : vector<1x5x1xf32> to vector<5x1xf32>
    %136 = vector.shape_cast %133 : vector<5x1xf32> to vector<1x5x1xf32>
    tpu.vector_store %arg21[%c0_74, %c0_75, %c0_76], %136 {strides = array<i32>} : memref<1x5x1xf32, #tpu.memory_space<vmem>>, vector<1x5x1xf32>,
    %c0_77 = arith.constant 0 : index
    %c0_78 = arith.constant 0 : index
    %c0_79 = arith.constant 0 : index
    %137 = vector.load %arg22[%c0_77, %c0_78, %c0_79] : memref<1x5x128xf32, #tpu.memory_space<vmem>>, vector<1x5x128xf32>
    %138 = vector.shape_cast %137 : vector<1x5x128xf32> to vector<5x128xf32>
    %139 = vector.shape_cast %92 : vector<5x128xf32> to vector<1x5x128xf32>
    tpu.vector_store %arg22[%c0_77, %c0_78, %c0_79], %139 {strides = array<i32>} : memref<1x5x128xf32, #tpu.memory_space<vmem>>, vector<1x5x128xf32>,
    %140 = vector.shape_cast %52 : vector<1x128xf32> to vector<1x128xf32>
    %141 = vector.broadcast %140 : vector<1x128xf32> to vector<5x128xf32>
    %c0_80 = arith.constant 0 : index
    %c0_81 = arith.constant 0 : index
    %c0_82 = arith.constant 0 : index
    %142 = vector.load %arg23[%c0_80, %c0_81, %c0_82] : memref<1x5x128xf32, #tpu.memory_space<vmem>>, vector<1x5x128xf32>
    %143 = vector.shape_cast %142 : vector<1x5x128xf32> to vector<5x128xf32>
    %144 = vector.shape_cast %141 : vector<5x128xf32> to vector<1x5x128xf32>
    tpu.vector_store %arg23[%c0_80, %c0_81, %c0_82], %144 {strides = array<i32>} : memref<1x5x128xf32, #tpu.memory_space<vmem>>, vector<1x5x128xf32>,
    return
  }
  func.func @transform_0(%arg0: i32) -> (i32, i32, i32) {
    %c0_i32 = arith.constant 0 : i32
    %c0_i32_0 = arith.constant 0 : i32
    %c0_i32_1 = arith.constant 0 : i32
    return %arg0, %c0_i32, %c0_i32_0 : i32, i32, i32
  }
  func.func @transform_1(%arg0: i32) -> (i32, i32, i32) {
    %c0_i32 = arith.constant 0 : i32
    %c0_i32_0 = arith.constant 0 : i32
    %c0_i32_1 = arith.constant 0 : i32
    return %arg0, %c0_i32, %c0_i32_0 : i32, i32, i32
  }
  func.func @transform_2(%arg0: i32) -> (i32, i32, i32) {
    %c0_i32 = arith.constant 0 : i32
    %c0_i32_0 = arith.constant 0 : i32
    %c0_i32_1 = arith.constant 0 : i32
    return %arg0, %c0_i32, %c0_i32_0 : i32, i32, i32
  }
  func.func @transform_3(%arg0: i32) -> (i32, i32, i32) {
    %c0_i32 = arith.constant 0 : i32
    %c0_i32_0 = arith.constant 0 : i32
    %c0_i32_1 = arith.constant 0 : i32
    return %arg0, %c0_i32, %c0_i32_0 : i32, i32, i32
  }
  func.func @transform_4(%arg0: i32) -> (i32, i32) {
    %c0_i32 = arith.constant 0 : i32
    %c0_i32_0 = arith.constant 0 : i32
    %c0_i32_1 = arith.constant 0 : i32
    return %c0_i32, %c0_i32_0 : i32, i32
  }
  func.func @transform_5(%arg0: i32) -> (i32, i32) {
    %c0_i32 = arith.constant 0 : i32
    %c0_i32_0 = arith.constant 0 : i32
    %c0_i32_1 = arith.constant 0 : i32
    return %c0_i32, %c0_i32_0 : i32, i32
  }
  func.func @transform_6(%arg0: i32) -> (i32, i32) {
    %c0_i32 = arith.constant 0 : i32
    %c0_i32_0 = arith.constant 0 : i32
    %c0_i32_1 = arith.constant 0 : i32
    return %c0_i32, %c0_i32_0 : i32, i32
  }
  func.func @transform_7(%arg0: i32) -> (i32, i32) {
    %c0_i32 = arith.constant 0 : i32
    %c0_i32_0 = arith.constant 0 : i32
    %c0_i32_1 = arith.constant 0 : i32
    return %c0_i32, %c0_i32_0 : i32, i32
  }
  func.func @transform_8(%arg0: i32) -> (i32, i32) {
    %c0_i32 = arith.constant 0 : i32
    %c0_i32_0 = arith.constant 0 : i32
    %c0_i32_1 = arith.constant 0 : i32
    return %c0_i32, %c0_i32_0 : i32, i32
  }
  func.func @transform_9(%arg0: i32) -> (i32, i32) {
    %c0_i32 = arith.constant 0 : i32
    %c0_i32_0 = arith.constant 0 : i32
    %c0_i32_1 = arith.constant 0 : i32
    return %c0_i32, %c0_i32_0 : i32, i32
  }
  func.func @transform_10(%arg0: i32) -> (i32, i32) {
    %c0_i32 = arith.constant 0 : i32
    %c0_i32_0 = arith.constant 0 : i32
    %c0_i32_1 = arith.constant 0 : i32
    return %c0_i32, %c0_i32_0 : i32, i32
  }
  func.func @transform_11(%arg0: i32) -> (i32, i32) {
    %c0_i32 = arith.constant 0 : i32
    %c0_i32_0 = arith.constant 0 : i32
    %c0_i32_1 = arith.constant 0 : i32
    return %c0_i32, %c0_i32_0 : i32, i32
  }
  func.func @transform_12(%arg0: i32) -> (i32, i32) {
    %c0_i32 = arith.constant 0 : i32
    %c0_i32_0 = arith.constant 0 : i32
    %c0_i32_1 = arith.constant 0 : i32
    return %c0_i32, %c0_i32_0 : i32, i32
  }
  func.func @transform_13(%arg0: i32) -> (i32, i32) {
    %c0_i32 = arith.constant 0 : i32
    %c0_i32_0 = arith.constant 0 : i32
    %c0_i32_1 = arith.constant 0 : i32
    return %c0_i32, %c0_i32_0 : i32, i32
  }
  func.func @transform_14(%arg0: i32) -> (i32, i32) {
    %c0_i32 = arith.constant 0 : i32
    %c0_i32_0 = arith.constant 0 : i32
    %c0_i32_1 = arith.constant 0 : i32
    return %c0_i32, %c0_i32_0 : i32, i32
  }
  func.func @transform_15(%arg0: i32) -> (i32, i32) {
    %c0_i32 = arith.constant 0 : i32
    %c0_i32_0 = arith.constant 0 : i32
    %c0_i32_1 = arith.constant 0 : i32
    return %c0_i32, %c0_i32_0 : i32, i32
  }
  func.func @transform_16(%arg0: i32) -> (i32, i32) {
    %c0_i32 = arith.constant 0 : i32
    %c0_i32_0 = arith.constant 0 : i32
    %c0_i32_1 = arith.constant 0 : i32
    return %c0_i32, %c0_i32_0 : i32, i32
  }
  func.func @transform_17(%arg0: i32) -> (i32, i32, i32) {
    %c0_i32 = arith.constant 0 : i32
    %c0_i32_0 = arith.constant 0 : i32
    %c0_i32_1 = arith.constant 0 : i32
    return %arg0, %c0_i32, %c0_i32_0 : i32, i32, i32
  }
  func.func @transform_18(%arg0: i32) -> (i32, i32, i32) {
    %c0_i32 = arith.constant 0 : i32
    %c0_i32_0 = arith.constant 0 : i32
    %c0_i32_1 = arith.constant 0 : i32
    return %arg0, %c0_i32, %c0_i32_0 : i32, i32, i32
  }
  func.func @transform_19(%arg0: i32) -> (i32, i32, i32) {
    %c0_i32 = arith.constant 0 : i32
    %c0_i32_0 = arith.constant 0 : i32
    %c0_i32_1 = arith.constant 0 : i32
    return %arg0, %c0_i32, %c0_i32_0 : i32, i32, i32
  }
  func.func @transform_20(%arg0: i32) -> (i32, i32, i32) {
    %c0_i32 = arith.constant 0 : i32
    %c0_i32_0 = arith.constant 0 : i32
    %c0_i32_1 = arith.constant 0 : i32
    return %arg0, %c0_i32, %c0_i32_0 : i32, i32, i32
  }
  func.func @transform_21(%arg0: i32) -> (i32, i32, i32) {
    %c0_i32 = arith.constant 0 : i32
    %c0_i32_0 = arith.constant 0 : i32
    %c0_i32_1 = arith.constant 0 : i32
    return %arg0, %c0_i32, %c0_i32_0 : i32, i32, i32
  }
  func.func @transform_22(%arg0: i32) -> (i32, i32, i32) {
    %c0_i32 = arith.constant 0 : i32
    %c0_i32_0 = arith.constant 0 : i32
    %c0_i32_1 = arith.constant 0 : i32
    return %arg0, %c0_i32, %c0_i32_0 : i32, i32, i32
  }
}

</mosaic_0001>

<bundles_post_ra>
// kernel: context_conditioned_policy_forward.3
= control target key start
LH: loop header
LB: loop body
LE: loop exit
PB: predicated region body
PF: predicated region fallthrough
CT: control target
= control target key end

     0   :  { %s3063_s0 = inlined_call_operand.vmem [shape: f32[2,8,32], index: 0, kind: input, shape index: {}]   ;;  %s3064_s1 = inlined_call_operand.vmem [shape: f32[2,5,32], index: 1, kind: input, shape index: {}]   ;;  %s3065_s2 = inlined_call_operand.vmem [shape: f32[2,1,128], index: 2, kind: input, shape index: {}]   ;;  %s3066_s3 = inlined_call_operand.vmem [shape: f32[2,5,128], index: 3, kind: input, shape index: {}]   ;;  %s3067_s4 = inlined_call_operand.hbm [shape: bf16[32,128], index: 4, kind: input, shape index: {}]   ;;  %s3068_s5 = inlined_call_operand.vmem [shape: f32[1,128], index: 5, kind: input, shape index: {}]   ;;  %s3069_s6 = inlined_call_operand.vmem [shape: bf16[128,128], index: 6, kind: input, shape index: {}]   ;;  %s3070_s7 = inlined_call_operand.hbm [shape: f32[1,128], index: 7, kind: input, shape index: {}]   ;;  %s3071_s8 = inlined_call_operand.vmem [shape: bf16[128,256], index: 8, kind: input, shape index: {}]   ;;  %s3072_s9 = inlined_call_operand.hbm [shape: f32[1,256], index: 9, kind: input, shape index: {}]   ;;  %s3073_s10 = inlined_call_operand.vmem [shape: bf16[32,128], index: 10, kind: input, shape index: {}]   ;;  %s3074_s11 = inlined_call_operand.hbm [shape: bf16[128,128], index: 11, kind: input, shape index: {}]   ;;  %s3075_s12 = inlined_call_operand.vmem [shape: f32[1,128], index: 12, kind: input, shape index: {}]   ;;  %s3076_s13 = inlined_call_operand.hbm [shape: bf16[128,128], index: 13, kind: input, shape index: {}]   ;;  %s3077_s14 = inlined_call_operand.vmem [shape: f32[1,128], index: 14, kind: input, shape index: {}]   ;;  %s3078_s15 = inlined_call_operand.vmem [shape: bf16[128,256], index: 15, kind: input, shape index: {}]   ;;  %s3079_s16 = inlined_call_operand.vmem [shape: f32[1,256], index: 16, kind: input, shape index: {}]   ;;  %s3080_s17 = inlined_call_operand.vmem [shape: f32[2,5,128], index: 17, kind: output, shape index: {0}]   ;;  %s3081_s18 = inlined_call_operand.vmem [shape: f32[2,5,128], index: 18, kind: output, shape index: {1}]   ;;  %s3082_s19 = inlined_call_operand.vmem [shape: f32[2,5,128], index: 19, kind: output, shape index: {2}]   ;;  %s3083_s20 = inlined_call_operand.vmem [shape: f32[2,5,1], index: 20, kind: output, shape index: {3}]   ;;  %s3084_s21 = inlined_call_operand.vmem [shape: f32[2,5,128], index: 21, kind: output, shape index: {4}]   ;;  %s3085_s22 = inlined_call_operand.vmem [shape: f32[2,5,128], index: 22, kind: output, shape index: {5}]  }
   0x1   :  { %3091 = sst [smem:[#allocation14_spill]] %s3063_s0 }
   0x2   :  { %3092 = sst [smem:[#allocation15_spill]] %s3064_s1 }
   0x3   :  { %3093 = sst [smem:[#allocation16_spill]] %s3065_s2 }
   0x4   :  { %3094 = sst [smem:[#allocation17_spill]] %s3066_s3 }
   0x5   :  { %3095 = sst [smem:[#allocation18_spill]] %s3067_s4 }
   0x6   :  { %3096 = sst [smem:[#allocation19_spill]] %s3068_s5 }
   0x7   :  { %3097 = sst [smem:[#allocation20_spill]] %s3069_s6 }
   0x8   :  { %3098 = sst [smem:[#allocation21_spill]] %s3070_s7 }
   0x9   :  { %3099 = sst [smem:[#allocation22_spill]] %s3080_s17 }
   0xa   :  { %3100 = sst [smem:[#allocation23_spill]] %s3083_s20 }
   0xb   :  { %3101 = sst [smem:[#allocation24_spill]] %s3084_s21 }
   0xc   :  { %28 = vsyncpa [#allocation3], 0 }
   0xd   :  { %29 = vsyncpa [#allocation5], 0 }
   0xe   :  { %30 = vsyncpa [#allocation8], 0  ;;  %s2649_s3 = smov 0  }
   0xf LB: > { %3102 = sst [smem:[#allocation13_spill]] %s2522_s3  ;;  %s2524_s28 = smov [#allocation4]   ;;  %s2522_s3 = sphi %s2649_s3, %s36_s3  }
  0x10   : > { %s606_s29 = sshll.u32 %s2524_s28, 4  ;;  %s2655_s30 = sadd.s32 4294967295, %s2522_s3   ;;  %s2660_s29 = int_to_ptr.vmem [resolvable:$true] %s606_s29 }
  0x11   : > { %p2003_p0 = scmp.ge.s32.totalorder %s2522_s3, 1  ;;  %p574_p1 = scmp.lt.s32.totalorder %s2522_s3, 3 }
  0x12   : > { %p3089_p2 = scmp.eq.s32.totalorder %s2655_s30, 0  ;;  %s2525_s0 = smov [#allocation7]  }
  0x13   : > { %p2662_p3 = pnand %p2003_p0, %p574_p1  ;;  %s633_s23 = sshll.u32 %s2525_s0, 4  ;;  %s2668_s23 = int_to_ptr.vmem [resolvable:$true] %s633_s23 }
  0x14   : > { %s2526_s5 = smov [#allocation2]   ;;  %s2527_s6 = smov [#allocation6]  }
  0x15   : > { %s3103_s4 = scalar_select %p2662_p3, 1, 0 }
  0x16   : > { %p2224_p4 = pneg %p2662_p3  ;;  %s586_s24 = sshll.u32 %s2526_s5, 4  ;;  %s2676_s24 = int_to_ptr.vmem [resolvable:$true] %s586_s24 }
  0x17   : > { %s2678_s25 = sshll.u32 %s2527_s6, 4  ;;  %s3105_s7 = sld [smem:[#allocation21_spill]]  ;;  %s621_s25 = int_to_ptr.vmem [resolvable:$true] %s2678_s25 }
  0x18   : > { %p2672_p5 = pnand %p3089_p2, %p2224_p4 }
  0x1a   : > { %p2688_p7 = pneg %p2672_p5 }
  0x1d   : > { %s2364_s27 = scalar_lea.hbm %s3105_s7, 16 }
  0x1e   : > { %p2365_p6 = scmp.ne.s32.totalorder %s3105_s7, %s2364_s27  ;;  %p2371_p10 = scmp.lt.u32.totalorder %s2364_s27, %s3105_s7 }
  0x20   : > { %p2367_p8 = pnand %p2688_p7, %p2365_p6 }
  0x22   : > { %p2368_p9 = pneg %p2367_p8 }
  0x24   : > { %p2373_p11 = pnand %p2371_p10, %p2368_p9 }
  0x26   : > { %2376 = shalt.err (!%p2373_p11)
}
  0x27   : > { %s2377_s26 = scalar_lea.vmem %s2660_s29, 16  ;;  %s2384_s2 = scalar_lea.vmem %s2660_s29, 32 }
  0x28   : > { %p2378_p12 = scmp.ne.s32.totalorder %s2660_s29, %s2377_s26  ;;  %p2385_p1 = scmp.lt.s32.totalorder %s2660_s29, %s2660_s29 }
  0x29   : > { %p2386_p4 = scmp.lt.s32.totalorder %s2384_s2, %s2377_s26 }
  0x2a   : > { %p2380_p13 = pnand %p2378_p12, %p2688_p7 }
  0x2b   : > { %p2387_p6 = por %p2386_p4, %p2385_p1 }
  0x2c   : > { %p2381_p0 = pneg %p2380_p13 }
  0x2e   : > { %p2388_p8 = pnand %p2387_p6, %p2381_p0 }
  0x30   : > { %2391 = shalt.err (!%p2388_p8)
}
  0x31   : > { %2230 = dma.hbm_to_vmem [thread:$0]  (!%p2672_p5), %s3105_s7, 16, %s2660_s29, [#allocation5]  }
  0x32   : > { %s2392_s6 = scalar_lea.hbm %s3074_s11, 1024 }
  0x33   : > { %p2393_p9 = scmp.ne.s32.totalorder %s3074_s11, %s2392_s6  ;;  %p2399_p12 = scmp.lt.u32.totalorder %s2392_s6, %s3074_s11 }
  0x35   : > { %p2395_p10 = pnand %p2393_p9, %p2688_p7 }
  0x37   : > { %p2396_p11 = pneg %p2395_p10 }
  0x39   : > { %p2401_p13 = pnand %p2399_p12, %p2396_p11 }
  0x3b   : > { %2404 = shalt.err (!%p2401_p13)
}
  0x3c   : > { %s2405_s29 = scalar_lea.vmem %s2668_s23, 1024  ;;  %p2413_p6 = scmp.lt.s32.totalorder %s2668_s23, %s2668_s23 }
  0x3d   : > { %p2406_p0 = scmp.ne.s32.totalorder %s2668_s23, %s2405_s29  ;;  %p2414_p8 = scmp.lt.s32.totalorder %s2405_s29, %s2405_s29 }
  0x3f   : > { %p2408_p1 = pnand %p2406_p0, %p2688_p7  ;;  %p2415_p9 = por %p2414_p8, %p2413_p6 }
  0x41   : > { %p2409_p4 = pneg %p2408_p1 }
  0x43   : > { %p2416_p10 = pnand %p2415_p9, %p2409_p4 }
  0x45   : > { %2419 = shalt.err (!%p2416_p10)
}
  0x46   : > { %s2528_s17 = smov 64   ;;  %s2529_s20 = smov 4  }
  0x47   : > { %2236 = dma.hbm_to_vmem [thread:$0]  (!%p2672_p5), %s3074_s11, 1024, %s2668_s23, [#allocation8], %s2528_s17, %s2528_s17, %s2529_s20  }
  0x48   : > { %s3107_s6 = sld [smem:[#allocation18_spill]] }
  0x4e   : > { %s2420_s26 = scalar_lea.hbm %s3107_s6, 256 }
  0x4f   : > { %p2421_p11 = scmp.ne.s32.totalorder %s3107_s6, %s2420_s26  ;;  %p2427_p0 = scmp.lt.u32.totalorder %s2420_s26, %s3107_s6 }
  0x51   : > { %p2423_p12 = pnand %p2421_p11, %p2688_p7 }
  0x53   : > { %p2424_p13 = pneg %p2423_p12 }
  0x55   : > { %p2429_p1 = pnand %p2427_p0, %p2424_p13 }
  0x57   : > { %2432 = shalt.err (!%p2429_p1)
}
  0x58   : > { %s2433_s23 = scalar_lea.vmem %s2676_s24, 256  ;;  %p2441_p9 = scmp.lt.s32.totalorder %s2676_s24, %s2676_s24 }
  0x59   : > { %p2434_p4 = scmp.ne.s32.totalorder %s2676_s24, %s2433_s23  ;;  %p2442_p10 = scmp.lt.s32.totalorder %s2433_s23, %s2433_s23 }
  0x5b   : > { %p2436_p6 = pnand %p2434_p4, %p2688_p7  ;;  %p2443_p11 = por %p2442_p10, %p2441_p9 }
  0x5d   : > { %p2437_p8 = pneg %p2436_p6 }
  0x5f   : > { %p2444_p12 = pnand %p2443_p11, %p2437_p8 }
  0x61   : > { %2447 = shalt.err (!%p2444_p12)
}
  0x62   : > { %2227 = dma.hbm_to_vmem [thread:$0]  (!%p2672_p5), %s3107_s6, 256, %s2676_s24, [#allocation3], %s2528_s17, %s2528_s17, %s2529_s20  }
  0x63   : > { %s2448_s0 = scalar_lea.hbm %s3072_s9, 32 }
  0x64   : > { %p2449_p13 = scmp.ne.s32.totalorder %s3072_s9, %s2448_s0  ;;  %p2455_p4 = scmp.lt.u32.totalorder %s2448_s0, %s3072_s9 }
  0x66   : > { %p2451_p0 = pnand %p2449_p13, %p2688_p7 }
  0x68   : > { %p2452_p1 = pneg %p2451_p0 }
  0x6a   : > { %p2457_p6 = pnand %p2455_p4, %p2452_p1 }
  0x6c   : > { %2460 = shalt.err (!%p2457_p6)
}
  0x6d   : > { %s2461_s23 = scalar_lea.vmem %s621_s25, 32  ;;  %p2469_p11 = scmp.lt.s32.totalorder %s621_s25, %s621_s25 }
  0x6e   : > { %p2462_p8 = scmp.ne.s32.totalorder %s621_s25, %s2461_s23  ;;  %p2470_p12 = scmp.lt.s32.totalorder %s2461_s23, %s2461_s23 }
  0x70   : > { %p2464_p9 = pnand %p2462_p8, %p2688_p7  ;;  %p2471_p2 = por %p2470_p12, %p2469_p11 }
  0x72   : > { %p2465_p10 = pneg %p2464_p9 }
  0x74   : > { %p2472_p3 = pnand %p2471_p2, %p2465_p10 }
  0x76   : > { %2475 = shalt.err (!%p2472_p3)
}
  0x77   : > { %2233 = dma.hbm_to_vmem [thread:$0]  (!%p2672_p5), %s3072_s9, 32, %s621_s25, [#allocation5]  }
  0x78   : > { %s2530_s21 = smov [#allocation9]   ;;  %s2476_s5 = scalar_lea.hbm %s3076_s13, 1024 }
  0x79   : > { %s649_s27 = sshll.u32 %s2530_s21, 4  ;;  %p2477_p13 = scmp.ne.s32.totalorder %s3076_s13, %s2476_s5  ;;  %s650_s27 = int_to_ptr.vmem [resolvable:$true] %s649_s27 }
  0x7a   : > { %p2483_p0 = scmp.lt.u32.totalorder %s2476_s5, %s3076_s13 }
  0x7b   : > { %p2479_p2 = pnand %p2477_p13, %p2688_p7 }
  0x7d   : > { %p2480_p3 = pneg %p2479_p2 }
  0x7f   : > { %p2485_p1 = pnand %p2483_p0, %p2480_p3 }
  0x81   : > { %2488 = shalt.err (!%p2485_p1)
}
  0x82   : > { %s2489_s25 = scalar_lea.vmem %s650_s27, 1024  ;;  %p2497_p9 = scmp.lt.s32.totalorder %s650_s27, %s650_s27 }
  0x83   : > { %p2490_p4 = scmp.ne.s32.totalorder %s650_s27, %s2489_s25  ;;  %p2498_p10 = scmp.lt.s32.totalorder %s2489_s25, %s2489_s25 }
  0x85   : > { %p2492_p6 = pnand %p2490_p4, %p2688_p7  ;;  %p2499_p11 = por %p2498_p10, %p2497_p9 }
  0x87   : > { %p2493_p8 = pneg %p2492_p6 }
  0x89   : > { %p2500_p12 = pnand %p2499_p11, %p2493_p8 }
  0x8b   : > { %2503 = shalt.err (!%p2500_p12)
}
  0x8c   : > { %2239 = dma.hbm_to_vmem [thread:$0]  (!%p2672_p5), %s3076_s13, 1024, %s650_s27, [#allocation8], %s2528_s17, %s2528_s17, %s2529_s20  }
  0x8d   : > { %p3108_p13 = scmp.ne.s32.totalorder %s3103_s4, 0 }
  0x8e   : > { %p3109_p7 = scmp.eq.s32.totalorder (!%p3108_p13), %s2655_s30, 0 }
  0x8f   : > { %701 = sbr.rel (%p3108_p13) target bundleno = 1768 (0x6e8), region = 88 }
  0x96   : > { %2509 = dma.done.wait (%p3109_p7), [#allocation3], 256   ;;  %p3110_p2 = pmov %p3109_p7 }
  0x98   : > { %2511 = vsyncadd (%p3110_p2), [#allocation3], 4294967040  ;;  %p3111_p3 = pmov %p3110_p2 }
  0x99   : > { %p3112_p0 = pmov %p3110_p2 }
  0x9a   : > { %2513 = dma.done.wait (%p3111_p3), [#allocation5], 48  }
  0x9b   : > { %2515 = vsyncadd (%p3112_p0), [#allocation5], 4294967248  ;;  %p3113_p1 = pmov %p3112_p0 }
  0x9c   : > { %p3114_p5 = pmov %p3112_p0 }
  0x9d   : > { %2517 = dma.done.wait (%p3113_p1), [#allocation8], 2048  }
  0x9e   : > { %2519 = vsyncadd (%p3114_p5), [#allocation8], 4294965248  ;;  %p808_p4 = scmp.lt.s32.totalorder %s2655_s30, 1  ;;  %v2531_v0 = vmov 0.0   ;;  %vm2532_vm0 = vmmov 0   ;;  %s3115_s17 = sld [smem:[#allocation14_spill]]  ;;  %v1050_v63 = vlaneseq }
  0x9f   : > { %2128 = vmatprep.subr.bf16.mxu0 %v2531_v0  ;;  %2132 = vmatprep.mubr.msk.bf16.mxu0 %vm2532_vm0, %v2531_v0  ;;  %v2268_v1 = vld [vmem:[#allocation2] sm:$0xff]   ;;  %v2269_v2 = vld [vmem:[#allocation2 + $0x8] sm:$0xff]   ;;  %s3116_s28 = sld [smem:[#allocation20_spill]]  ;;  %vm873_vm1 = vcmask 261120   ;;  %v2283_v15 = vld [vmem:[%s3071_s8 + $0x14] ss:$8 sps:$4 sm:$0xff]  }
  0xa0   : > { %s3126_s30 = smov (!%p808_p4, %s2655_s30), 1  ;;  %2136 = vmatprep.subr.bf16.mxu1 %v2531_v0  ;;  %2152 = vmatprep.mubr.msk.bf16.mxu1 %vm2532_vm0, %v2531_v0  ;;  %v2278_v13 = vld [vmem:[%s3071_s8] ss:$8 sps:$4 sm:$0xff]   ;;  %v2280_v14 = vld [vmem:[%s3071_s8 + $0x4] ss:$8 sps:$4 sm:$0xff]   ;;  %s3117_s27 = sld [smem:[#allocation19_spill]] }
  0xa1   : > { %s2827_s3 = sshll.u32 %s3126_s30, 3  ;;  %2129 = vmatpush3.bf16.msra.mxu0 %v2268_v1  ;;  %v2281_v16 = vld [vmem:[%s3071_s8 + $0x10] ss:$8 sps:$4 sm:$0xff]   ;;  %v2286_v17 = vld [vmem:[%s3071_s8 + $0x24] ss:$8 sps:$4 sm:$0xff]   ;;  %v2533_v37 = vmov 0  }
  0xa2   : > { %2130 = vmatprep.subr.bf16.mxu0 %v2531_v0  ;;  %v2284_v18 = vld [vmem:[%s3071_s8 + $0x20] ss:$8 sps:$4 sm:$0xff]   ;;  %v2289_v19 = vld [vmem:[%s3071_s8 + $0x34] ss:$8 sps:$4 sm:$0xff]   ;;  %v2287_v20 = vld [vmem:[%s3071_s8 + $0x30] ss:$8 sps:$4 sm:$0xff]   ;;  %s846_s2 = scalar_lea.vmem %s3085_s22, %s2827_s3 }
  0xa3   : > { %v2292_v21 = vld [vmem:[%s3071_s8 + $0x44] ss:$8 sps:$4 sm:$0xff]   ;;  %v2290_v22 = vld [vmem:[%s3071_s8 + $0x40] ss:$8 sps:$4 sm:$0xff]   ;;  %v2295_v23 = vld [vmem:[%s3071_s8 + $0x54] ss:$8 sps:$4 sm:$0xff]  }
  0xa4   : > { %s811_s20 = scalar_lea.vmem %s3115_s17, %s2827_s3  ;;  %v2293_v24 = vld [vmem:[%s3071_s8 + $0x50] ss:$8 sps:$4 sm:$0xff]   ;;  %v2298_v25 = vld [vmem:[%s3071_s8 + $0x64] ss:$8 sps:$4 sm:$0xff]   ;;  %v2296_v26 = vld [vmem:[%s3071_s8 + $0x60] ss:$8 sps:$4 sm:$0xff]   ;;  %s834_s17 = scalar_lea.vmem %s3082_s19, %s2827_s3 }
  0xa5   : > { %v848_v3 = vld [vmem:[%s811_s20] sm:$0xff]  ;;  %v2271_v6 = vld [vmem:[%s3116_s28 + $0x8] sm:$0xff]   ;;  %2131 = vmatpush3.bf16.msra.mxu0 %v2269_v2  ;;  %v2272_v7 = vld [vmem:[%s3116_s28 + $0x10] sm:$0xff]   ;;  %s3118_s25 = sld [smem:[#allocation15_spill]]  ;;  %v2952_v1 = vshrl.u32 %v1050_v63, 7  ;;  %s3120_s26 = sld [smem:[#allocation17_spill]] }
  0xa6   : > { %v2270_v4 = vld [vmem:[%s3116_s28] sm:$0xff]   ;;  %v849_v5 = vpack.c.bf16 %v848_v3, %v848_v3  ;;  %v2273_v8 = vld [vmem:[%s3116_s28 + $0x18] sm:$0xff]   ;;  %v2275_v10 = vld [vmem:[%s3116_s28 + $0x28] sm:$0xff]   ;;  %1140 = vmatprep.subr.bf16.mxu0 %v2280_v14  ;;  %s3121_s23 = sld [smem:[#allocation24_spill]]  ;;  %s3122_s4 = sld [smem:[#allocation22_spill]]  ;;  %vm1682_vm5 = vcmask 1044480  }
  0xa7   : > { %2137 = vmatpush3.bf16.msra.mxu1 %v2270_v4  ;;  %v2274_v9 = vld [vmem:[%s3116_s28 + $0x20] sm:$0xff]   ;;  %v2276_v11 = vld [vmem:[%s3116_s28 + $0x30] sm:$0xff]   ;;  %v2277_v12 = vld [vmem:[%s3116_s28 + $0x38] sm:$0xff]   ;;  %v1056_v2 = vsub.s32 1, %v2952_v1  ;;  %s3123_s21 = sld [smem:[#allocation23_spill]]  ;;  %vm1702_vm6 = vcmask 4096  }
  0xa8   : > { %2138 = vmatprep.subr.bf16.mxu1 %v2531_v0  ;;  %2133 = vmatmul.mubr.msk.bf16.vlgmr.msra.gmra.mrb[0].mxu0 %vm873_vm1, %v849_v5  ;;  %v2025_v27 = vld [vmem:[%s3117_s27] ss:$0 sm:$0xff]  ;;  %v2301_v35 = vld [vmem:[%s3071_s8 + $0x74] ss:$8 sps:$4 sm:$0xff]   ;;  %v2299_v36 = vld [vmem:[%s3071_s8 + $0x70] ss:$8 sps:$4 sm:$0xff]  }
  0xa9   : > { %1141 = vmatpush1.bf16.msra.mxu0 %v2278_v13  ;;  %1172 = vmatprep.mubr.bf16.mxu0 %v2533_v37  ;;  %v2029_v38 = vld [vmem:[#allocation4] ss:$0 sm:$0xff]  ;;  %v2302_v46 = vld [vmem:[#allocation7] sm:$0xff]   ;;  %v2303_v47 = vld [vmem:[#allocation7 + $0x8] sm:$0xff]   ;;  %s3119_s27 = sld [smem:[#allocation16_spill]] }
  0xaa   : > { %1142 = vmatprep.subr.bf16.mxu0 %v2283_v15  ;;  %v2308_v48 = vld [vmem:[%s3073_s10] sm:$0xff]   ;;  %v2310_v49 = vld [vmem:[%s3073_s10 + $0x8] sm:$0xff]   ;;  %v2306_v54 = vld [vmem:[#allocation7 + $0x20] sm:$0xff]  }
  0xab   : > { %2139 = vmatpush3.bf16.msra.mxu1 %v2271_v6  ;;  %s815_s24 = scalar_lea.vmem %s3118_s25, %s2827_s3  ;;  %v2304_v51 = vld [vmem:[#allocation7 + $0x10] sm:$0xff]   ;;  %v2305_v53 = vld [vmem:[#allocation7 + $0x18] sm:$0xff]   ;;  %v2307_v55 = vld [vmem:[#allocation7 + $0x28] sm:$0xff]  }
  0xac   : > { %2140 = vmatprep.subr.bf16.mxu1 %v2531_v0  ;;  %v1219_v50 = vld [vmem:[%s815_s24] sm:$0x1f]  ;;  %v2311_v57 = vld [vmem:[#allocation7 + $0x38] sm:$0xff]   ;;  %v2312_v58 = vld [vmem:[#allocation9] sm:$0xff]   ;;  %s842_s25 = scalar_lea.vmem %s3121_s23, %s2827_s3  ;;  %s826_s1 = scalar_lea.vmem %s3122_s4, %s2827_s3 }
  0xad   : > { %1143 = vmatpush1.bf16.msra.mxu0 %v2281_v16  ;;  %v1220_v52 = vpack.c.bf16 %v1219_v50, %v1219_v50  ;;  %v2309_v56 = vld [vmem:[#allocation7 + $0x30] sm:$0xff]   ;;  %v2313_v59 = vld [vmem:[#allocation9 + $0x8] sm:$0xff]   ;;  %v2315_v61 = vld [vmem:[#allocation9 + $0x18] sm:$0xff]  }
  0xae   : > { %1144 = vmatprep.subr.bf16.mxu0 %v2286_v17  ;;  %v2314_v60 = vld [vmem:[#allocation9 + $0x10] sm:$0xff]   ;;  %v2316_v62 = vld [vmem:[#allocation9 + $0x20] sm:$0xff]   ;;  %v1048_v3 = vld [vmem:[#allocation6] sm:$0x3] }
  0xaf   : > { %2141 = vmatpush3.bf16.msra.mxu1 %v2272_v7  ;;  %v1057_v4 = vrot.slane %v1048_v3, %v1056_v2  ;;  %s818_s0 = scalar_lea.vmem %s3119_s27, %s3126_s30  ;;  %s830_s27 = scalar_lea.vmem %s3081_s18, %s2827_s3 }
  0xb0   : > { %2142 = vmatprep.subr.bf16.mxu1 %v2531_v0 }
  0xb1   : > { %1145 = vmatpush1.bf16.msra.mxu0 %v2284_v18 }
  0xb2   : > { %1146 = vmatprep.subr.bf16.mxu0 %v2289_v19 }
  0xb3   : > { %2143 = vmatpush3.bf16.msra.mxu1 %v2273_v8 }
  0xb4   : > { %2144 = vmatprep.subr.bf16.mxu1 %v2531_v0 }
  0xb5   : > { %1147 = vmatpush1.bf16.msra.mxu0 %v2287_v20  ;;  %v2958_v20 = vsub.s32 0, %v2952_v1 }
  0xb6   : > { %1148 = vmatprep.subr.bf16.mxu0 %v2292_v21 }
  0xb7   : > { %2145 = vmatpush3.bf16.msra.mxu1 %v2274_v9  ;;  %v1053_v21 = vrot.slane %v1048_v3, %v2958_v20  ;;  %v2329_v3 = vld [vmem:[%s3078_s15 + $0x30] ss:$8 sps:$4 sm:$0xff]  }
  0xb8   : > { %2146 = vmatprep.subr.bf16.mxu1 %v2531_v0 }
  0xb9   : > { %1149 = vmatpush1.bf16.msra.mxu0 %v2290_v22 }
  0xba   : > { %1150 = vmatprep.subr.bf16.mxu0 %v2295_v23 }
  0xbb   : > { %2147 = vmatpush3.bf16.msra.mxu1 %v2275_v10 }
  0xbc   : > { %2148 = vmatprep.subr.bf16.mxu1 %v2531_v0 }
  0xbd   : > { %1151 = vmatpush1.bf16.msra.mxu0 %v2293_v24 }
  0xbe   : > { %1152 = vmatprep.subr.bf16.mxu0 %v2298_v25 }
  0xbf   : > { %2149 = vmatpush3.bf16.msra.mxu1 %v2276_v11 }
  0xc0   : > { %2150 = vmatprep.subr.bf16.mxu1 %v2531_v0 }
  0xc1   : > { %1153 = vmatpush1.bf16.msra.mxu0 %v2296_v26 }
  0xc2   : > { %1154 = vmatprep.subr.bf16.mxu0 %v2301_v35 }
  0xc3   : > { %2151 = vmatpush3.bf16.msra.mxu1 %v2277_v12 }
  0xc4   : > { %2156 = vmatprep.subr.bf16.mxu1 %v2531_v0 }
  0xc5   : > { %1155 = vmatpush1.bf16.msra.mxu0 %v2299_v36 }
  0xc6   : > { %2176 = vmatprep.subr.bf16.mxu0 %v2531_v0 }
 0x17b   : > { %v911_v28 = vpop.f32.mrb[0].mxu0 }
 0x17c   : > { %v912_v29 = vadd.f32 %v2025_v27, %v911_v28  ;;  %v2134_v30 = vpop.f32.mrb[1].mxu0 }
 0x17d   : > { %v914_v31 = vpop.f32.mrb[2].mxu0 }
 0x17e   : > { %v917_v32 = vmax.f32 %v912_v29, 0.0  ;;  %v2135_v33 = vpop.f32.mrb[3].mxu0 }
 0x180   : > { %v918_v34 = vpack.c.bf16 %v917_v32, %v917_v32 }
 0x182   : > { %2153 = vmatmul.mubr.bf16.vlgmr.msra.gmra.mrb[0].mxu1 %v918_v34 }
 0x183   : > { %2172 = vmatprep.mubr.msk.bf16.mxu1 %vm2532_vm0, %v2531_v0  ;;  %2157 = vmatpush3.bf16.msra.mxu1 %v2302_v46 }
 0x184   : > { %2158 = vmatprep.subr.bf16.mxu1 %v2531_v0 }
 0x187   : > { %2159 = vmatpush3.bf16.msra.mxu1 %v2303_v47 }
 0x188   : > { %2160 = vmatprep.subr.bf16.mxu1 %v2531_v0 }
 0x18b   : > { %2161 = vmatpush3.bf16.msra.mxu1 %v2304_v51 }
 0x18c   : > { %2162 = vmatprep.subr.bf16.mxu1 %v2531_v0 }
 0x18f   : > { %2163 = vmatpush3.bf16.msra.mxu1 %v2305_v53 }
 0x190   : > { %2164 = vmatprep.subr.bf16.mxu1 %v2531_v0 }
 0x193   : > { %2165 = vmatpush3.bf16.msra.mxu1 %v2306_v54  ;;  %v2317_v54 = vld [vmem:[#allocation9 + $0x28] sm:$0xff]  }
 0x194   : > { %2166 = vmatprep.subr.bf16.mxu1 %v2531_v0 }
 0x197   : > { %2167 = vmatpush3.bf16.msra.mxu1 %v2307_v55  ;;  %v2318_v55 = vld [vmem:[#allocation9 + $0x30] sm:$0xff]  }
 0x198   : > { %2168 = vmatprep.subr.bf16.mxu1 %v2531_v0 }
 0x19b   : > { %2169 = vmatpush3.bf16.msra.mxu1 %v2309_v56  ;;  %v2319_v56 = vld [vmem:[#allocation9 + $0x38] sm:$0xff]  }
 0x19c   : > { %2170 = vmatprep.subr.bf16.mxu1 %v2531_v0 }
 0x19f   : > { %2171 = vmatpush3.bf16.msra.mxu1 %v2311_v57  ;;  %v2320_v57 = vld [vmem:[%s3078_s15] ss:$8 sps:$4 sm:$0xff]  }
 0x255   : > { %v1024_v39 = vpop.f32.mrb[0].mxu1 }
 0x256   : > { %v1025_v40 = vadd.f32 %v2029_v38, %v1024_v39  ;;  %v2154_v41 = vpop.f32.mrb[1].mxu1 }
 0x257   : > { %v1027_v42 = vpop.f32.mrb[2].mxu1 }
 0x258   : > { %v1030_v43 = vmax.f32 %v1025_v40, 0.0  ;;  %v2155_v44 = vpop.f32.mrb[3].mxu1 }
 0x25a   : > { %v1031_v45 = vpack.c.bf16 %v1030_v43, %v1030_v43  ;;  %v1216_v43 = vld [vmem:[%s818_s0] sm:$0x1] }
 0x25c   : > { %1173 = vmatmul.mubr.bf16.vlgmr.msra.gmra.mrb[4].mxu0 %v1031_v45 }
 0x25d   : > { %2180 = vmatprep.mubr.msk.bf16.mxu0 %vm2532_vm0, %v2531_v0  ;;  %2177 = vmatpush3.bf16.msra.mxu0 %v2308_v48 }
 0x25e   : > { %2178 = vmatprep.subr.bf16.mxu0 %v2531_v0 }
 0x261   : > { %2179 = vmatpush3.bf16.msra.mxu0 %v2310_v49 }
 0x262   : > { %2184 = vmatprep.subr.bf16.mxu0 %v2531_v0 }
 0x264   : > { %2181 = vmatmul.mubr.msk.bf16.vlgmr.msra.gmra.mrb[8].mxu0 %vm873_vm1, %v1220_v52 }
 0x265   : > { %2200 = vmatprep.mubr.msk.bf16.mxu0 %vm2532_vm0, %v2531_v0  ;;  %2185 = vmatpush3.bf16.msra.mxu0 %v2312_v58  ;;  %v2325_v58 = vld [vmem:[%s3078_s15 + $0x14] ss:$8 sps:$4 sm:$0xff]  }
 0x266   : > { %2186 = vmatprep.subr.bf16.mxu0 %v2531_v0 }
 0x269   : > { %2187 = vmatpush3.bf16.msra.mxu0 %v2313_v59  ;;  %v2323_v59 = vld [vmem:[%s3078_s15 + $0x10] ss:$8 sps:$4 sm:$0xff]  }
 0x26a   : > { %2188 = vmatprep.subr.bf16.mxu0 %v2531_v0 }
 0x26d   : > { %2189 = vmatpush3.bf16.msra.mxu0 %v2314_v60  ;;  %v2328_v60 = vld [vmem:[%s3078_s15 + $0x24] ss:$8 sps:$4 sm:$0xff]  }
 0x26e   : > { %2190 = vmatprep.subr.bf16.mxu0 %v2531_v0 }
 0x271   : > { %2191 = vmatpush3.bf16.msra.mxu0 %v2315_v61  ;;  %v2326_v61 = vld [vmem:[%s3078_s15 + $0x20] ss:$8 sps:$4 sm:$0xff]  }
 0x272   : > { %2192 = vmatprep.subr.bf16.mxu0 %v2531_v0 }
 0x275   : > { %2193 = vmatpush3.bf16.msra.mxu0 %v2316_v62  ;;  %v2331_v62 = vld [vmem:[%s3078_s15 + $0x34] ss:$8 sps:$4 sm:$0xff]  }
 0x276   : > { %2194 = vmatprep.subr.bf16.mxu0 %v2531_v0 }
 0x279   : > { %2195 = vmatpush3.bf16.msra.mxu0 %v2317_v54 }
 0x27a   : > { %2196 = vmatprep.subr.bf16.mxu0 %v2531_v0 }
 0x27d   : > { %2197 = vmatpush3.bf16.msra.mxu0 %v2318_v55 }
 0x27e   : > { %2198 = vmatprep.subr.bf16.mxu0 %v2531_v0 }
 0x281   : > { %2199 = vmatpush3.bf16.msra.mxu0 %v2319_v56 }
 0x32f   : > { %v1174_v5 = vpop.f32.mrb[4].mxu0 }
 0x330   : > { %v1176_v6 = vpop.f32.mrb[5].mxu0  ;;  %v1175_v22 = vadd.f32 %v1174_v5, %v1053_v21  ;;  %v2332_v5 = vld [vmem:[%s3078_s15 + $0x40] ss:$8 sps:$4 sm:$0xff]   ;;  %v2343_v21 = vld [vmem:[%s3078_s15 + $0x74] ss:$8 sps:$4 sm:$0xff]  }
 0x331   : > { %v1177_v7 = vadd.f32 %v1176_v6, %v1057_v4  ;;  %v1178_v8 = vpop.f32.mrb[6].mxu0  ;;  %v2334_v4 = vld [vmem:[%s3078_s15 + $0x44] ss:$8 sps:$4 sm:$0xff]   ;;  %v2337_v6 = vld [vmem:[%s3078_s15 + $0x54] ss:$8 sps:$4 sm:$0xff]  }
 0x332   : > { %v1179_v9 = vpop.f32.mrb[7].mxu0  ;;  %v2340_v8 = vld [vmem:[%s3078_s15 + $0x64] ss:$8 sps:$4 sm:$0xff]  }
 0x333   : > { %v1182_v10 = vand.u32 2147483647, %v1177_v7  ;;  %v1181_v16 = vmax.f32 %v1177_v7, 0.0  ;;  %v2335_v7 = vld [vmem:[%s3078_s15 + $0x50] ss:$8 sps:$4 sm:$0xff]  }
 0x334   : > { %v2338_v9 = vld [vmem:[%s3078_s15 + $0x60] ss:$8 sps:$4 sm:$0xff]  }
 0x335   : > { %v1183_v11 = vsub.f32 0.0, %v1182_v10 }
 0x337   : > { %v1184_v12 = vmul.f32 1.442695, %v1183_v11  ;;  %v1383_v50 = vpop.f32.mrb[8].mxu0 }
 0x338   : > { %v2182_v51 = vpop.f32.mrb[9].mxu0 }
 0x339   : > { %2344 = vpow2.f32 %v1184_v12  ;;  %v1386_v52 = vpop.f32.mrb[10].mxu0 }
 0x33a   : > { %v2183_v53 = vpop.f32.mrb[11].mxu0 }
 0x343   : > { %v2345_v13 = vpop.eup %2344 }
 0x344   : > { %v1186_v14 = vadd.f32 1.0, %v2345_v13  ;;  %v2065_v13 = vld [vmem:[%s3075_s12] ss:$0 sm:$0xff] }
 0x346   : > { %2346 = vlog2.f32 %v1186_v14 }
 0x350   : > { %v2347_v15 = vpop.eup %2346 }
 0x351   : > { %v1188_v17 = vmul.f32 0.6931472, %v2347_v15 }
 0x353   : > { %v1189_v18 = vadd.f32 %v1188_v17, %v1181_v16 }
 0x355   : > { %v1190_v19 = vmax.f32 %v1189_v18, 1e-07 }
 0x357   : > { %2348 = vrcp.f32 %v1190_v19 }
 0x361   : > { %v2349_v23 = vpop.eup %2348 }
 0x362   : > { %v1193_v24 = vrot.slane %v2349_v23, 4  ;;  %v1201_v25 = vmul.f32 %v2349_v23, %v1175_v22  ;;  %v2341_v22 = vld [vmem:[%s3078_s15 + $0x70] ss:$8 sps:$4 sm:$0xff]  }
 0x364   : > { %v1194_v26 = vadd.f32 %v2349_v23, %v1193_v24  ;;  %v1202_v27 = vrot.slane %v1201_v25, 4  ;;  %v2066_v23 = vld [vmem:[%s3077_s14] ss:$0 sm:$0xff] }
 0x366   : > { %v1195_v28 = vrot.slane %v1194_v26, 2  ;;  %v1203_v29 = vadd.f32 %v1202_v27, %v1201_v25 }
 0x368   : > { %v1196_v30 = vadd.f32 %v1195_v28, %v1194_v26  ;;  %v1204_v32 = vrot.slane %v1203_v29, 2 }
 0x36a   : > { %v1197_v31 = vrot.slane %v1196_v30, 1  ;;  %v1205_v34 = vadd.f32 %v1204_v32, %v1203_v29 }
 0x36c   : > { %v1198_v33 = vadd.f32 %v1197_v31, %v1196_v30  ;;  %v1206_v35 = vrot.slane %v1205_v34, 1  ;;  %v1528_v31 = vld [vmem:[%s3079_s16] sm:$0x3] }
 0x36d   : > { %v1533_v32 = vrot.slane %v1528_v31, %v2958_v20 }
 0x36e   : > { %2350 = vrcp.f32 %v1198_v33  ;;  %v1207_v36 = vadd.f32 %v1206_v35, %v1205_v34  ;;  %v1537_v33 = vrot.slane %v1528_v31, %v1056_v2 }
 0x378   : > { %v2351_v38 = vpop.eup %2350 }
 0x379   : > { %v1208_v39 = vmul.f32 %v2351_v38, %v1207_v36  ;;  %2352 = vrsqrt.f32 %v2351_v38  ;;  %vm1211_vm2 = vcmp.eq.f32.partialorder %v2351_v38, inf  ;;  %v1214_v42 = vand.u32 2147483648, %v2351_v38 }
 0x37a   : > { %vm1213_vm3 = vcmp.eq.f32.partialorder %v2351_v38, 0.0 }
 0x383   : > { %v2353_v40 = vpop.eup %2352 }
 0x384   : > { %v1210_v41 = vmul.f32 %v2353_v40, %v2351_v38 }
 0x386   : > { %v1212_v44 = vsel %vm1211_vm2, %v2351_v38, %v1210_v41 }
 0x387   : > { %v1215_v45 = vsel %vm1213_vm3, %v1214_v42, %v1212_v44 }
 0x388   : > { %v1217_v46 = vmul.f32 %v1216_v43, %v1215_v45 }
 0x38a   : > { %v1218_v47 = vadd.f32 %v1217_v46, %v1208_v39 }
 0x38c   : > { %v1225_v48 = vpack.c.bf16 %v1218_v47, %v1218_v47  ;;  %v1708_v49 = vrot.slane %v1218_v47, %v2958_v20 }
 0x38e   : > { %2173 = vmatmul.mubr.bf16.vlgmr.msra.gmra.mrb[4].mxu1 %v1225_v48  ;;  %1709 = vst [vmem:[%s846_s2] sm:$0x1f] %v1708_v49  ;;  %s822_s2 = scalar_lea.vmem %s3120_s26, %s2827_s3  ;;  %v1670_v48 = vand.u32 127, %v1050_v63 }
 0x38f   : > { %1652 = vmatprep.mubr.bf16.mxu1 %v2533_v37  ;;  %v2322_v37 = vld [vmem:[%s3078_s15 + $0x4] ss:$8 sps:$4 sm:$0xff]  }
 0x390   : > { %1620 = vmatprep.subr.bf16.mxu1 %v2322_v37  ;;  %v1665_v2 = vld [vmem:[%s822_s2] sm:$0x1f]  ;;  %vm1671_vm4 = vcmp.lt.s32.totalorder %v1670_v48, 6 }
 0x391   : > { %1621 = vmatpush1.bf16.msra.mxu1 %v2320_v57  ;;  %v2091_v56 = vsel %vm1671_vm4, 1.0, %v2531_v0 }
 0x392   : > { %1622 = vmatprep.subr.bf16.mxu1 %v2325_v58 }
 0x395   : > { %1623 = vmatpush1.bf16.msra.mxu1 %v2323_v59 }
 0x396   : > { %1624 = vmatprep.subr.bf16.mxu1 %v2328_v60 }
 0x399   : > { %1625 = vmatpush1.bf16.msra.mxu1 %v2326_v61 }
 0x39a   : > { %1626 = vmatprep.subr.bf16.mxu1 %v2331_v62 }
 0x39d   : > { %1627 = vmatpush1.bf16.msra.mxu1 %v2329_v3 }
 0x39e   : > { %1628 = vmatprep.subr.bf16.mxu1 %v2334_v4 }
 0x3a1   : > { %1629 = vmatpush1.bf16.msra.mxu1 %v2332_v5 }
 0x3a2   : > { %1630 = vmatprep.subr.bf16.mxu1 %v2337_v6 }
 0x3a5   : > { %1631 = vmatpush1.bf16.msra.mxu1 %v2335_v7 }
 0x3a6   : > { %1632 = vmatprep.subr.bf16.mxu1 %v2340_v8 }
 0x3a9   : > { %1633 = vmatpush1.bf16.msra.mxu1 %v2338_v9 }
 0x3aa   : > { %1634 = vmatprep.subr.bf16.mxu1 %v2343_v21 }
 0x3ad   : > { %1635 = vmatpush1.bf16.msra.mxu1 %v2341_v22 }
 0x461   : > { %v1324_v10 = vpop.f32.mrb[4].mxu1 }
 0x462   : > { %v1333_v11 = vrot.slane %v1324_v10, %v2958_v20  ;;  %v2174_v12 = vpop.f32.mrb[5].mxu1 }
 0x463   : > { %v1327_v14 = vpop.f32.mrb[6].mxu1 }
 0x464   : > { %v1384_v15 = vadd.f32 %v1383_v50, %v1333_v11  ;;  %v2175_v16 = vpop.f32.mrb[7].mxu1 }
 0x466   : > { %v1396_v17 = vadd.f32 %v2065_v13, %v1384_v15 }
 0x468   : > { %v1397_v18 = vmax.f32 %v1396_v17, 0.0 }
 0x46a   : > { %v1398_v19 = vpack.c.bf16 %v1397_v18, %v1397_v18 }
 0x46c   : > { %2201 = vmatmul.mubr.bf16.vlgmr.msra.gmra.mrb[12].mxu0 %v1398_v19 }
 0x53f   : > { %v1504_v24 = vpop.f32.mrb[12].mxu0 }
 0x540   : > { %v1505_v25 = vadd.f32 %v2066_v23, %v1504_v24  ;;  %v2202_v26 = vpop.f32.mrb[13].mxu0 }
 0x541   : > { %v1507_v27 = vpop.f32.mrb[14].mxu0 }
 0x542   : > { %v1510_v28 = vmax.f32 %v1505_v25, 0.0  ;;  %v2203_v29 = vpop.f32.mrb[15].mxu0 }
 0x544   : > { %v1511_v30 = vpack.c.bf16 %v1510_v28, %v1510_v28 }
 0x546   : > { %1653 = vmatmul.mubr.bf16.vlgmr.msra.gmra.mrb[8].mxu1 %v1511_v30 }
 0x619   : > { %v1654_v34 = vpop.f32.mrb[8].mxu1 }
 0x61a   : > { %v1655_v35 = vadd.f32 %v1654_v34, %v1533_v32  ;;  %v1656_v36 = vpop.f32.mrb[9].mxu1 }
 0x61b   : > { %v1657_v38 = vadd.f32 %v1656_v36, %v1537_v33  ;;  %v1658_v39 = vpop.f32.mrb[10].mxu1 }
 0x61c   : > { %2354 = vtanh.f32 %v1655_v35  ;;  %v1659_v40 = vpop.f32.mrb[11].mxu1 }
 0x61d   : > { %v1661_v41 = vmax.f32 %v1657_v38, -20.0 }
 0x61f   : > { %v1662_v42 = vmin.f32 %v1661_v41, 2.0 }
 0x621   : > { %v1663_v43 = vmul.f32 1.442695, %v1662_v42  ;;  %1700 = vst [vmem:[%s834_s17] sm:$0x1f] %v1662_v42 }
 0x623   : > { %2356 = vpow2.f32 %v1663_v43 }
 0x626   : > { %v2355_v1 = vpop.eup %2354 }
 0x627   : > { %1699 = vst [vmem:[%s830_s27] sm:$0x1f] %v2355_v1  ;;  %s838_s27 = scalar_lea.vmem %s3123_s21, %s2827_s3 }
 0x62d   : > { %v2357_v20 = vpop.eup %2356 }
 0x62e   : > { %2358 = vrcp.f32 %v2357_v20  ;;  %v1666_v44 = vmul.f32 %v2357_v20, %v1665_v2 }
 0x630   : > { %v1667_v45 = vadd.f32 %v1666_v44, %v1655_v35 }
 0x632   : > { %v1674_v46 = vsub.f32 %v1667_v45, %v1655_v35  ;;  %1704 = vst [vmem:[%s842_s25] sm:$0x1f] %v1667_v45  ;;  %2360 = vtanh.f32 %v1667_v45 }
 0x638   : > { %v2359_v47 = vpop.eup %2358 }
 0x639   : > { %v1676_v49 = vmul.f32 %v2359_v47, %v1674_v46 }
 0x63b   : > { %v1677_v50 = vmul.f32 %v1676_v49, %v1676_v49 }
 0x63c   : > { %v2361_v51 = vpop.eup %2360 }
 0x63d   : > { %v1678_v52 = vmul.f32 -0.5, %v1677_v50  ;;  %1697 = vst [vmem:[%s826_s1] sm:$0x1f] %v2361_v51  ;;  %v1686_v53 = vmul.f32 %v2361_v51, %v2361_v51 }
 0x63f   : > { %v1679_v54 = vsub.f32 %v1678_v52, %v1662_v42  ;;  %v1687_v55 = vsub.f32 1.0, %v1686_v53 }
 0x641   : > { %v2092_v57 = vadd.f32 -0.9189385, %v1679_v54  ;;  %v1688_v37 = vmax.f32 %v1687_v55, 0.0 }
 0x643   : > { %v1681_v63 = vmul.f32 %v2092_v57, %v2091_v56  ;;  %v1689_v58 = vmin.f32 %v1688_v37, 1.0 }
 0x645   : > { %v1683_v59 = vsel %vm1682_vm5, %v1681_v63, 0.0  ;;  %v1690_v60 = vadd.f32 1e-06, %v1689_v58 }
 0x646   : > { %1684 = vadd.xlane.f32.xlu0 %v1683_v59 }
 0x647   : > { %2362 = vlog2.f32 %v1690_v60 }
 0x651   : > { %v2363_v61 = vpop.eup %2362 }
 0x652   : > { %v1692_v62 = vmul.f32 0.6931472, %v2363_v61 }
 0x654   : > { %v1693_v3 = vmul.f32 %v2091_v56, %v1692_v62 }
 0x656   : > { %v1694_v4 = vsel %vm1682_vm5, %v1693_v3, 0.0 }
 0x657   : > { %1695 = vadd.xlane.f32.xlu0 %v1694_v4 }
 0x6d3   : > { %v1685_v5 = vpop.xlane.xlu0 %1684 }
 0x6e4   : > { %v1696_v0 = vpop.xlane.xlu0 %1695 }
 0x6e5   : > { %v1701_v6 = vsub.f32 %v1685_v5, %v1696_v0 }
 0x6e7   : > { %1703 = vst.msk [vmem:[%s838_s27] sm:$0x1f] %vm1702_vm6, %v1701_v6 }
 0x6e8 PF: > { %s3124_s0 = sld [smem:[#allocation13_spill]] }
 0x6ee   : > { %s36_s3 = sadd.s32 1, %s3124_s0  }
 0x6ef   : > { %p33_p6 = scmp.ge.s32.totalorder %s36_s3, 4  }
 0x6f1   :  { %35 = sbr.rel (!%p33_p6) target bundleno = 15 (0xf), region = 208 }
 0x6f8   :  { %1799 = vsyncpa [#allocation3], 1 }
 0x6f9   :  { %1801 = vsyncpa [#allocation3 + $0x1], 1 }
 0x6fa   :  { %1802 = vsyncpa [#allocation5], 1 }
 0x6fb   :  { %1803 = vsyncpa [#allocation8], 1 }

</bundles_post_ra>
